<compile_context>
chip_gen: v7x
topology: tpu7x:2x2x1
jax: 0.10.0
libtpu: 0.0.40
codegen_flags: <defaults>
</compile_context>

<pallas_src>
import functools

import jax
import jax.numpy as jnp
from jax.experimental import pallas as pl
from jax.experimental.pallas import tpu as pltpu


# --------------------------------------------------------------------------- kernel
def _fused_tcn_fc_kernel(*refs, B, T, K, pad_max, cin0, has_down):
    """Fused TCN (all TemporalBlocks) + last-timestep FC, single invocation.

    refs layout:
      x (B, T, cin0),
      per block: w1 (K,Cin,Cout), b1 (1,Cout), w2 (K,Cout,Cout), b2 (1,Cout),
                 [wd (Cin,Cout), bd (1,Cout)]  (only when has_down[i]),
      fc_w (C_last, label_dim), fc_b (1, label_dim),
      out (B, label_dim),
      buf_in (B, pad_max+T, C_max), buf_tmp (B, pad_max+T, C_max)   [VMEM scratch]
    """
    it = iter(refs)
    x_ref = next(it)
    blocks = []
    for hd in has_down:
        blk = {"w1": next(it), "b1": next(it), "w2": next(it), "b2": next(it)}
        if hd:
            blk["wd"] = next(it)
            blk["bd"] = next(it)
        blocks.append(blk)
    fc_w_ref = next(it)
    fc_b_ref = next(it)
    out_ref = next(it)
    buf_in = next(it)
    buf_tmp = next(it)

    f32 = jnp.float32
    L = len(blocks)

    # Zero both activation buffers once; the causal-pad rows [0, pad_max) stay
    # zero forever since all activation writes go to rows [pad_max, pad_max+T).
    buf_in[...] = jnp.zeros_like(buf_in)
    buf_tmp[...] = jnp.zeros_like(buf_tmp)
    for b in range(B):  # copy input (already mask-concatenated) into the data region
        buf_in[b, pl.ds(pad_max, T), pl.ds(0, cin0)] = x_ref[b]

    def dilated_conv(src_buf, cin, w_ref, d):
        """Batch-folded causal dilated conv: returns (B*T, Cout) f32 accumulator."""
        pad = (K - 1) * d
        off0 = pad_max - pad
        cout = w_ref.shape[-1]
        acc = jnp.zeros((B * T, cout), f32)
        for k in range(K):  # static unroll over kernel taps
            xk = jnp.concatenate(
                [src_buf[b, pl.ds(off0 + k * d, T), pl.ds(0, cin)] for b in range(B)],
                axis=0)  # (B*T, cin)
            acc = acc + jnp.dot(xk, w_ref[k], preferred_element_type=f32)
        return acc

    cin = cin0
    y = None
    for i, blk in enumerate(blocks):
        d = 2 ** i
        cout = blk["w1"].shape[-1]

        # conv1 + bias + ReLU   (dropout = identity in eval mode)
        h = dilated_conv(buf_in, cin, blk["w1"], d) + blk["b1"][...]
        h = jnp.maximum(h, 0.0)
        for b in range(B):
            buf_tmp[b, pl.ds(pad_max, T), pl.ds(0, cout)] = h[b * T:(b + 1) * T]

        # conv2 + bias + residual + ReLU
        h2 = dilated_conv(buf_tmp, cout, blk["w2"], d) + blk["b2"][...]
        res = jnp.concatenate(
            [buf_in[b, pl.ds(pad_max, T), pl.ds(0, cin)] for b in range(B)], axis=0)
        if "wd" in blk:  # 1x1-conv downsample on the residual path
            res = jnp.dot(res, blk["wd"][...], preferred_element_type=f32) + blk["bd"][...]
        y = jnp.maximum(h2 + res, 0.0)  # (B*T, cout)

        if i < L - 1:  # next block reads its input from buf_in
            for b in range(B):
                buf_in[b, pl.ds(pad_max, T), pl.ds(0, cout)] = y[b * T:(b + 1) * T]
        cin = cout

    # Final FC on the last timestep only (== y[:, :, -1] in PyTorch NCW layout).
    fc_w = fc_w_ref[...]
    fc_b = fc_b_ref[...]
    for b in range(B):
        yb = y[b * T + T - 1: b * T + T]  # (1, C_last)
        ob = jnp.dot(yb, fc_w, preferred_element_type=f32) + fc_b
        out_ref[pl.ds(b, 1), :] = ob.astype(out_ref.dtype)


# --------------------------------------------------------------------------- wrapper
def label_mapping_traj_part(traj, mask, params, *, kernel_size):
    """Forward of Label_mapping_traj_part (eval mode) as a single fused pallas_call."""
    x = traj
    if mask is not None:
        x = jnp.concatenate([traj, mask[:, :, None]], axis=-1)  # mask as extra channel
    B, T, cin0 = x.shape

    blocks = params["blocks"]
    L = len(blocks)
    K = kernel_size
    pad_max = (K - 1) * (2 ** (L - 1))
    c_max = max([cin0] + [blk["w1"].shape[-1] for blk in blocks])
    label_dim = params["fc_w"].shape[-1]
    has_down = tuple("wd" in blk for blk in blocks)

    flat = [x]
    for blk in blocks:
        flat += [blk["w1"], blk["b1"], blk["w2"], blk["b2"]]
        if "wd" in blk:
            flat += [blk["wd"], blk["bd"]]
    flat += [params["fc_w"], params["fc_b"]]

    kern = functools.partial(
        _fused_tcn_fc_kernel, B=B, T=T, K=K, pad_max=pad_max, cin0=cin0,
        has_down=has_down)

    return pl.pallas_call(
        kern,
        out_shape=jax.ShapeDtypeStruct((B, label_dim), jnp.float32),
        scratch_shapes=[
            pltpu.VMEM((B, pad_max + T, c_max), jnp.float32),
            pltpu.VMEM((B, pad_max + T, c_max), jnp.float32),
        ],
    )(*flat)


# --------------------------------------------------------------------------- reference
def reference_forward(traj, mask, params, *, kernel_size):
    """Pure-JAX reference mirroring the PyTorch NCW computation."""
    x = jnp.concatenate([traj, mask[:, :, None]], axis=-1)
    x = jnp.transpose(x, (0, 2, 1))  # (B, C, T)

    def conv(inp, w, b, d, pad):
        wt = jnp.transpose(w, (2, 1, 0))  # (K,Cin,Cout) -> (Cout,Cin,K)
        out = jax.lax.conv_general_dilated(
            inp, wt, window_strides=(1,), padding=[(pad, 0)], rhs_dilation=(d,),
            dimension_numbers=("NCH", "OIH", "NCH"))
        return out + b.reshape(1, -1, 1)

    for i, blk in enumerate(params["blocks"]):
        d = 2 ** i
        pad = (kernel_size - 1) * d
        h = jax.nn.relu(conv(x, blk["w1"], blk["b1"], d, pad))
        h2 = conv(h, blk["w2"], blk["b2"], d, pad)
        if "wd" in blk:
            wd = jnp.transpose(blk["wd"], (1, 0))[:, :, None]
            res = jax.lax.conv_general_dilated(
                x, wd, (1,), [(0, 0)], dimension_numbers=("NCH", "OIH", "NCH"))
            res = res + blk["bd"].reshape(1, -1, 1)
        else:
            res = x
        x = jax.nn.relu(h2 + res)
    y_last = x[:, :, -1]
    return y_last @ params["fc_w"] + params["fc_b"]


# --------------------------------------------------------------------------- params
def init_params(key, input_channels, num_channels, label_dim, kernel_size):
    params = {"blocks": []}
    cin = input_channels
    for cout in num_channels:
        key, k1, k2, k3, k4, k5, k6 = jax.random.split(key, 7)
        blk = {
            "w1": 0.1 * jax.random.normal(k1, (kernel_size, cin, cout), jnp.float32),
            "b1": 0.1 * jax.random.normal(k2, (1, cout), jnp.float32),
            "w2": 0.1 * jax.random.normal(k3, (kernel_size, cout, cout), jnp.float32),
            "b2": 0.1 * jax.random.normal(k4, (1, cout), jnp.float32),
        }
        if cin != cout:
            blk["wd"] = 0.1 * jax.random.normal(k5, (cin, cout), jnp.float32)
            blk["bd"] = 0.1 * jax.random.normal(k6, (1, cout), jnp.float32)
        params["blocks"].append(blk)
        cin = cout
    key, kf1, kf2 = jax.random.split(key, 3)
    params["fc_w"] = 0.1 * jax.random.normal(kf1, (cin, label_dim), jnp.float32)
    params["fc_b"] = 0.1 * jax.random.normal(kf2, (1, label_dim), jnp.float32)
    return params


# --------------------------------------------------------------------------- main
if __name__ == "__main__":
    B, T, F = 2, 32, 3                 # traj: (batch, seq, features)
    num_channels = [8, 8]              # two TCN levels (dilations 1, 2)
    kernel_size = 4
    label_dim = 16
    input_channels = F + 1             # mask is concatenated as an extra channel

    key = jax.random.PRNGKey(0)
    key, kt, km = jax.random.split(key, 3)
    traj = jax.random.normal(kt, (B, T, F), jnp.float32)
    mask = (jax.random.uniform(km, (B, T)) > 0.3).astype(jnp.float32)

    params = init_params(key, input_channels, num_channels, label_dim, kernel_size)

    out = label_mapping_traj_part(traj, mask, params, kernel_size=kernel_size)
    out = jax.block_until_ready(out)

    ref = reference_forward(traj, mask, params, kernel_size=kernel_size)
    assert out.shape == (B, label_dim), out.shape
    assert jnp.allclose(out, ref, atol=1e-4, rtol=1e-4), (
        float(jnp.max(jnp.abs(out - ref))))

    print("KERNEL_OK")
</pallas_src>

<mosaic_0001>
module attributes {stable_mosaic.version = 11 : i64} {
  func.func @_fused_tcn_fc_kernel(%arg0: memref<2x32x4xf32, #tpu.memory_space<vmem>>, %arg1: memref<4x4x8xf32, #tpu.memory_space<vmem>>, %arg2: memref<1x8xf32, #tpu.memory_space<vmem>>, %arg3: memref<4x8x8xf32, #tpu.memory_space<vmem>>, %arg4: memref<1x8xf32, #tpu.memory_space<vmem>>, %arg5: memref<4x8xf32, #tpu.memory_space<vmem>>, %arg6: memref<1x8xf32, #tpu.memory_space<vmem>>, %arg7: memref<4x8x8xf32, #tpu.memory_space<vmem>>, %arg8: memref<1x8xf32, #tpu.memory_space<vmem>>, %arg9: memref<4x8x8xf32, #tpu.memory_space<vmem>>, %arg10: memref<1x8xf32, #tpu.memory_space<vmem>>, %arg11: memref<8x16xf32, #tpu.memory_space<vmem>>, %arg12: memref<1x16xf32, #tpu.memory_space<vmem>>, %arg13: memref<2x16xf32, #tpu.memory_space<vmem>>, %arg14: memref<2x38x8xf32, #tpu.memory_space<vmem>>, %arg15: memref<2x38x8xf32, #tpu.memory_space<vmem>>) attributes {dimension_semantics = [], scalar_prefetch = 0 : i64, scratch_operands = 2 : i64, tpu.core_type = #tpu.core_type<tc>} {
    %cst = arith.constant 0.000000e+00 : f32
    %0 = vector.broadcast %cst : f32 to vector<2x38x8xf32>
    %c0 = arith.constant 0 : index
    %c0_0 = arith.constant 0 : index
    %c0_1 = arith.constant 0 : index
    %1 = vector.load %arg14[%c0, %c0_0, %c0_1] : memref<2x38x8xf32, #tpu.memory_space<vmem>>, vector<2x38x8xf32>
    tpu.vector_store %arg14[%c0, %c0_0, %c0_1], %0 {strides = array<i32>} : memref<2x38x8xf32, #tpu.memory_space<vmem>>, vector<2x38x8xf32>,
    %cst_2 = arith.constant 0.000000e+00 : f32
    %2 = vector.broadcast %cst_2 : f32 to vector<2x38x8xf32>
    %c0_3 = arith.constant 0 : index
    %c0_4 = arith.constant 0 : index
    %c0_5 = arith.constant 0 : index
    %3 = vector.load %arg15[%c0_3, %c0_4, %c0_5] : memref<2x38x8xf32, #tpu.memory_space<vmem>>, vector<2x38x8xf32>
    tpu.vector_store %arg15[%c0_3, %c0_4, %c0_5], %2 {strides = array<i32>} : memref<2x38x8xf32, #tpu.memory_space<vmem>>, vector<2x38x8xf32>,
    %c0_6 = arith.constant 0 : index
    %c0_7 = arith.constant 0 : index
    %c0_8 = arith.constant 0 : index
    %4 = vector.load %arg0[%c0_6, %c0_7, %c0_8] : memref<2x32x4xf32, #tpu.memory_space<vmem>>, vector<1x32x4xf32>
    %5 = vector.shape_cast %4 : vector<1x32x4xf32> to vector<32x4xf32>
    %c0_9 = arith.constant 0 : index
    %c6 = arith.constant 6 : index
    %c0_10 = arith.constant 0 : index
    %6 = vector.load %arg14[%c0_9, %c6, %c0_10] : memref<2x38x8xf32, #tpu.memory_space<vmem>>, vector<1x32x4xf32>
    %7 = vector.shape_cast %6 : vector<1x32x4xf32> to vector<32x4xf32>
    %8 = vector.shape_cast %5 : vector<32x4xf32> to vector<1x32x4xf32>
    tpu.vector_store %arg14[%c0_9, %c6, %c0_10], %8 {strides = array<i32>} : memref<2x38x8xf32, #tpu.memory_space<vmem>>, vector<1x32x4xf32>,
    %c1 = arith.constant 1 : index
    %c0_11 = arith.constant 0 : index
    %c0_12 = arith.constant 0 : index
    %9 = vector.load %arg0[%c1, %c0_11, %c0_12] : memref<2x32x4xf32, #tpu.memory_space<vmem>>, vector<1x32x4xf32>
    %10 = vector.shape_cast %9 : vector<1x32x4xf32> to vector<32x4xf32>
    %c1_13 = arith.constant 1 : index
    %c6_14 = arith.constant 6 : index
    %c0_15 = arith.constant 0 : index
    %11 = vector.load %arg14[%c1_13, %c6_14, %c0_15] : memref<2x38x8xf32, #tpu.memory_space<vmem>>, vector<1x32x4xf32>
    %12 = vector.shape_cast %11 : vector<1x32x4xf32> to vector<32x4xf32>
    %13 = vector.shape_cast %10 : vector<32x4xf32> to vector<1x32x4xf32>
    tpu.vector_store %arg14[%c1_13, %c6_14, %c0_15], %13 {strides = array<i32>} : memref<2x38x8xf32, #tpu.memory_space<vmem>>, vector<1x32x4xf32>,
    %cst_16 = arith.constant 0.000000e+00 : f32
    %14 = vector.broadcast %cst_16 : f32 to vector<64x8xf32>
    %c0_17 = arith.constant 0 : index
    %c3 = arith.constant 3 : index
    %c0_18 = arith.constant 0 : index
    %15 = vector.load %arg14[%c0_17, %c3, %c0_18] : memref<2x38x8xf32, #tpu.memory_space<vmem>>, vector<1x32x4xf32>
    %16 = vector.shape_cast %15 : vector<1x32x4xf32> to vector<32x4xf32>
    %c1_19 = arith.constant 1 : index
    %c3_20 = arith.constant 3 : index
    %c0_21 = arith.constant 0 : index
    %17 = vector.load %arg14[%c1_19, %c3_20, %c0_21] : memref<2x38x8xf32, #tpu.memory_space<vmem>>, vector<1x32x4xf32>
    %18 = vector.shape_cast %17 : vector<1x32x4xf32> to vector<32x4xf32>
    %19 = tpu.concatenate %16, %18 in 0 : vector<32x4xf32>, vector<32x4xf32> -> vector<64x4xf32>
    %c0_22 = arith.constant 0 : index
    %c0_23 = arith.constant 0 : index
    %c0_24 = arith.constant 0 : index
    %20 = vector.load %arg1[%c0_22, %c0_23, %c0_24] : memref<4x4x8xf32, #tpu.memory_space<vmem>>, vector<1x4x8xf32>
    %21 = vector.shape_cast %20 : vector<1x4x8xf32> to vector<4x8xf32>
    %cst_25 = arith.constant dense<0.000000e+00> : vector<64x8xf32>
    %22 = tpu.matmul %19, %21, %cst_25 {dimension_numbers = #tpu.dot_dimension_numbers<[1], [0], [0], [1], [0, 0, 1, 1], [], []>} : vector<64x4xf32>, vector<4x8xf32>, vector<64x8xf32> -> vector<64x8xf32>
    %23 = arith.addf %14, %22 : vector<64x8xf32>
    %c0_26 = arith.constant 0 : index
    %c4 = arith.constant 4 : index
    %c0_27 = arith.constant 0 : index
    %24 = vector.load %arg14[%c0_26, %c4, %c0_27] : memref<2x38x8xf32, #tpu.memory_space<vmem>>, vector<1x32x4xf32>
    %25 = vector.shape_cast %24 : vector<1x32x4xf32> to vector<32x4xf32>
    %c1_28 = arith.constant 1 : index
    %c4_29 = arith.constant 4 : index
    %c0_30 = arith.constant 0 : index
    %26 = vector.load %arg14[%c1_28, %c4_29, %c0_30] : memref<2x38x8xf32, #tpu.memory_space<vmem>>, vector<1x32x4xf32>
    %27 = vector.shape_cast %26 : vector<1x32x4xf32> to vector<32x4xf32>
    %28 = tpu.concatenate %25, %27 in 0 : vector<32x4xf32>, vector<32x4xf32> -> vector<64x4xf32>
    %c1_31 = arith.constant 1 : index
    %c0_32 = arith.constant 0 : index
    %c0_33 = arith.constant 0 : index
    %29 = vector.load %arg1[%c1_31, %c0_32, %c0_33] : memref<4x4x8xf32, #tpu.memory_space<vmem>>, vector<1x4x8xf32>
    %30 = vector.shape_cast %29 : vector<1x4x8xf32> to vector<4x8xf32>
    %cst_34 = arith.constant dense<0.000000e+00> : vector<64x8xf32>
    %31 = tpu.matmul %28, %30, %cst_34 {dimension_numbers = #tpu.dot_dimension_numbers<[1], [0], [0], [1], [0, 0, 1, 1], [], []>} : vector<64x4xf32>, vector<4x8xf32>, vector<64x8xf32> -> vector<64x8xf32>
    %32 = arith.addf %23, %31 : vector<64x8xf32>
    %c0_35 = arith.constant 0 : index
    %c5 = arith.constant 5 : index
    %c0_36 = arith.constant 0 : index
    %33 = vector.load %arg14[%c0_35, %c5, %c0_36] : memref<2x38x8xf32, #tpu.memory_space<vmem>>, vector<1x32x4xf32>
    %34 = vector.shape_cast %33 : vector<1x32x4xf32> to vector<32x4xf32>
    %c1_37 = arith.constant 1 : index
    %c5_38 = arith.constant 5 : index
    %c0_39 = arith.constant 0 : index
    %35 = vector.load %arg14[%c1_37, %c5_38, %c0_39] : memref<2x38x8xf32, #tpu.memory_space<vmem>>, vector<1x32x4xf32>
    %36 = vector.shape_cast %35 : vector<1x32x4xf32> to vector<32x4xf32>
    %37 = tpu.concatenate %34, %36 in 0 : vector<32x4xf32>, vector<32x4xf32> -> vector<64x4xf32>
    %c2 = arith.constant 2 : index
    %c0_40 = arith.constant 0 : index
    %c0_41 = arith.constant 0 : index
    %38 = vector.load %arg1[%c2, %c0_40, %c0_41] : memref<4x4x8xf32, #tpu.memory_space<vmem>>, vector<1x4x8xf32>
    %39 = vector.shape_cast %38 : vector<1x4x8xf32> to vector<4x8xf32>
    %cst_42 = arith.constant dense<0.000000e+00> : vector<64x8xf32>
    %40 = tpu.matmul %37, %39, %cst_42 {dimension_numbers = #tpu.dot_dimension_numbers<[1], [0], [0], [1], [0, 0, 1, 1], [], []>} : vector<64x4xf32>, vector<4x8xf32>, vector<64x8xf32> -> vector<64x8xf32>
    %41 = arith.addf %32, %40 : vector<64x8xf32>
    %c0_43 = arith.constant 0 : index
    %c6_44 = arith.constant 6 : index
    %c0_45 = arith.constant 0 : index
    %42 = vector.load %arg14[%c0_43, %c6_44, %c0_45] : memref<2x38x8xf32, #tpu.memory_space<vmem>>, vector<1x32x4xf32>
    %43 = vector.shape_cast %42 : vector<1x32x4xf32> to vector<32x4xf32>
    %c1_46 = arith.constant 1 : index
    %c6_47 = arith.constant 6 : index
    %c0_48 = arith.constant 0 : index
    %44 = vector.load %arg14[%c1_46, %c6_47, %c0_48] : memref<2x38x8xf32, #tpu.memory_space<vmem>>, vector<1x32x4xf32>
    %45 = vector.shape_cast %44 : vector<1x32x4xf32> to vector<32x4xf32>
    %46 = tpu.concatenate %43, %45 in 0 : vector<32x4xf32>, vector<32x4xf32> -> vector<64x4xf32>
    %c3_49 = arith.constant 3 : index
    %c0_50 = arith.constant 0 : index
    %c0_51 = arith.constant 0 : index
    %47 = vector.load %arg1[%c3_49, %c0_50, %c0_51] : memref<4x4x8xf32, #tpu.memory_space<vmem>>, vector<1x4x8xf32>
    %48 = vector.shape_cast %47 : vector<1x4x8xf32> to vector<4x8xf32>
    %cst_52 = arith.constant dense<0.000000e+00> : vector<64x8xf32>
    %49 = tpu.matmul %46, %48, %cst_52 {dimension_numbers = #tpu.dot_dimension_numbers<[1], [0], [0], [1], [0, 0, 1, 1], [], []>} : vector<64x4xf32>, vector<4x8xf32>, vector<64x8xf32> -> vector<64x8xf32>
    %50 = arith.addf %41, %49 : vector<64x8xf32>
    %c0_53 = arith.constant 0 : index
    %c0_54 = arith.constant 0 : index
    %51 = vector.load %arg2[%c0_53, %c0_54] : memref<1x8xf32, #tpu.memory_space<vmem>>, vector<1x8xf32>
    %52 = vector.broadcast %51 : vector<1x8xf32> to vector<64x8xf32>
    %53 = arith.addf %50, %52 : vector<64x8xf32>
    %cst_55 = arith.constant 0.000000e+00 : f32
    %54 = vector.broadcast %cst_55 : f32 to vector<64x8xf32>
    %55 = arith.maximumf %53, %54 : vector<64x8xf32>
    %56 = vector.extract_strided_slice %55 {offsets = [0, 0], sizes = [32, 8], strides = [1, 1]} : vector<64x8xf32> to vector<32x8xf32>
    %c0_56 = arith.constant 0 : index
    %c6_57 = arith.constant 6 : index
    %c0_58 = arith.constant 0 : index
    %57 = vector.load %arg15[%c0_56, %c6_57, %c0_58] : memref<2x38x8xf32, #tpu.memory_space<vmem>>, vector<1x32x8xf32>
    %58 = vector.shape_cast %57 : vector<1x32x8xf32> to vector<32x8xf32>
    %59 = vector.shape_cast %56 : vector<32x8xf32> to vector<1x32x8xf32>
    tpu.vector_store %arg15[%c0_56, %c6_57, %c0_58], %59 {strides = array<i32>} : memref<2x38x8xf32, #tpu.memory_space<vmem>>, vector<1x32x8xf32>,
    %60 = vector.extract_strided_slice %55 {offsets = [32, 0], sizes = [32, 8], strides = [1, 1]} : vector<64x8xf32> to vector<32x8xf32>
    %c1_59 = arith.constant 1 : index
    %c6_60 = arith.constant 6 : index
    %c0_61 = arith.constant 0 : index
    %61 = vector.load %arg15[%c1_59, %c6_60, %c0_61] : memref<2x38x8xf32, #tpu.memory_space<vmem>>, vector<1x32x8xf32>
    %62 = vector.shape_cast %61 : vector<1x32x8xf32> to vector<32x8xf32>
    %63 = vector.shape_cast %60 : vector<32x8xf32> to vector<1x32x8xf32>
    tpu.vector_store %arg15[%c1_59, %c6_60, %c0_61], %63 {strides = array<i32>} : memref<2x38x8xf32, #tpu.memory_space<vmem>>, vector<1x32x8xf32>,
    %cst_62 = arith.constant 0.000000e+00 : f32
    %64 = vector.broadcast %cst_62 : f32 to vector<64x8xf32>
    %c0_63 = arith.constant 0 : index
    %c3_64 = arith.constant 3 : index
    %c0_65 = arith.constant 0 : index
    %65 = vector.load %arg15[%c0_63, %c3_64, %c0_65] : memref<2x38x8xf32, #tpu.memory_space<vmem>>, vector<1x32x8xf32>
    %66 = vector.shape_cast %65 : vector<1x32x8xf32> to vector<32x8xf32>
    %c1_66 = arith.constant 1 : index
    %c3_67 = arith.constant 3 : index
    %c0_68 = arith.constant 0 : index
    %67 = vector.load %arg15[%c1_66, %c3_67, %c0_68] : memref<2x38x8xf32, #tpu.memory_space<vmem>>, vector<1x32x8xf32>
    %68 = vector.shape_cast %67 : vector<1x32x8xf32> to vector<32x8xf32>
    %69 = tpu.concatenate %66, %68 in 0 : vector<32x8xf32>, vector<32x8xf32> -> vector<64x8xf32>
    %c0_69 = arith.constant 0 : index
    %c0_70 = arith.constant 0 : index
    %c0_71 = arith.constant 0 : index
    %70 = vector.load %arg3[%c0_69, %c0_70, %c0_71] : memref<4x8x8xf32, #tpu.memory_space<vmem>>, vector<1x8x8xf32>
    %71 = vector.shape_cast %70 : vector<1x8x8xf32> to vector<8x8xf32>
    %cst_72 = arith.constant dense<0.000000e+00> : vector<64x8xf32>
    %72 = tpu.matmul %69, %71, %cst_72 {dimension_numbers = #tpu.dot_dimension_numbers<[1], [0], [0], [1], [0, 0, 1, 1], [], []>} : vector<64x8xf32>, vector<8x8xf32>, vector<64x8xf32> -> vector<64x8xf32>
    %73 = arith.addf %64, %72 : vector<64x8xf32>
    %c0_73 = arith.constant 0 : index
    %c4_74 = arith.constant 4 : index
    %c0_75 = arith.constant 0 : index
    %74 = vector.load %arg15[%c0_73, %c4_74, %c0_75] : memref<2x38x8xf32, #tpu.memory_space<vmem>>, vector<1x32x8xf32>
    %75 = vector.shape_cast %74 : vector<1x32x8xf32> to vector<32x8xf32>
    %c1_76 = arith.constant 1 : index
    %c4_77 = arith.constant 4 : index
    %c0_78 = arith.constant 0 : index
    %76 = vector.load %arg15[%c1_76, %c4_77, %c0_78] : memref<2x38x8xf32, #tpu.memory_space<vmem>>, vector<1x32x8xf32>
    %77 = vector.shape_cast %76 : vector<1x32x8xf32> to vector<32x8xf32>
    %78 = tpu.concatenate %75, %77 in 0 : vector<32x8xf32>, vector<32x8xf32> -> vector<64x8xf32>
    %c1_79 = arith.constant 1 : index
    %c0_80 = arith.constant 0 : index
    %c0_81 = arith.constant 0 : index
    %79 = vector.load %arg3[%c1_79, %c0_80, %c0_81] : memref<4x8x8xf32, #tpu.memory_space<vmem>>, vector<1x8x8xf32>
    %80 = vector.shape_cast %79 : vector<1x8x8xf32> to vector<8x8xf32>
    %cst_82 = arith.constant dense<0.000000e+00> : vector<64x8xf32>
    %81 = tpu.matmul %78, %80, %cst_82 {dimension_numbers = #tpu.dot_dimension_numbers<[1], [0], [0], [1], [0, 0, 1, 1], [], []>} : vector<64x8xf32>, vector<8x8xf32>, vector<64x8xf32> -> vector<64x8xf32>
    %82 = arith.addf %73, %81 : vector<64x8xf32>
    %c0_83 = arith.constant 0 : index
    %c5_84 = arith.constant 5 : index
    %c0_85 = arith.constant 0 : index
    %83 = vector.load %arg15[%c0_83, %c5_84, %c0_85] : memref<2x38x8xf32, #tpu.memory_space<vmem>>, vector<1x32x8xf32>
    %84 = vector.shape_cast %83 : vector<1x32x8xf32> to vector<32x8xf32>
    %c1_86 = arith.constant 1 : index
    %c5_87 = arith.constant 5 : index
    %c0_88 = arith.constant 0 : index
    %85 = vector.load %arg15[%c1_86, %c5_87, %c0_88] : memref<2x38x8xf32, #tpu.memory_space<vmem>>, vector<1x32x8xf32>
    %86 = vector.shape_cast %85 : vector<1x32x8xf32> to vector<32x8xf32>
    %87 = tpu.concatenate %84, %86 in 0 : vector<32x8xf32>, vector<32x8xf32> -> vector<64x8xf32>
    %c2_89 = arith.constant 2 : index
    %c0_90 = arith.constant 0 : index
    %c0_91 = arith.constant 0 : index
    %88 = vector.load %arg3[%c2_89, %c0_90, %c0_91] : memref<4x8x8xf32, #tpu.memory_space<vmem>>, vector<1x8x8xf32>
    %89 = vector.shape_cast %88 : vector<1x8x8xf32> to vector<8x8xf32>
    %cst_92 = arith.constant dense<0.000000e+00> : vector<64x8xf32>
    %90 = tpu.matmul %87, %89, %cst_92 {dimension_numbers = #tpu.dot_dimension_numbers<[1], [0], [0], [1], [0, 0, 1, 1], [], []>} : vector<64x8xf32>, vector<8x8xf32>, vector<64x8xf32> -> vector<64x8xf32>
    %91 = arith.addf %82, %90 : vector<64x8xf32>
    %c0_93 = arith.constant 0 : index
    %c6_94 = arith.constant 6 : index
    %c0_95 = arith.constant 0 : index
    %92 = vector.load %arg15[%c0_93, %c6_94, %c0_95] : memref<2x38x8xf32, #tpu.memory_space<vmem>>, vector<1x32x8xf32>
    %93 = vector.shape_cast %92 : vector<1x32x8xf32> to vector<32x8xf32>
    %c1_96 = arith.constant 1 : index
    %c6_97 = arith.constant 6 : index
    %c0_98 = arith.constant 0 : index
    %94 = vector.load %arg15[%c1_96, %c6_97, %c0_98] : memref<2x38x8xf32, #tpu.memory_space<vmem>>, vector<1x32x8xf32>
    %95 = vector.shape_cast %94 : vector<1x32x8xf32> to vector<32x8xf32>
    %96 = tpu.concatenate %93, %95 in 0 : vector<32x8xf32>, vector<32x8xf32> -> vector<64x8xf32>
    %c3_99 = arith.constant 3 : index
    %c0_100 = arith.constant 0 : index
    %c0_101 = arith.constant 0 : index
    %97 = vector.load %arg3[%c3_99, %c0_100, %c0_101] : memref<4x8x8xf32, #tpu.memory_space<vmem>>, vector<1x8x8xf32>
    %98 = vector.shape_cast %97 : vector<1x8x8xf32> to vector<8x8xf32>
    %cst_102 = arith.constant dense<0.000000e+00> : vector<64x8xf32>
    %99 = tpu.matmul %96, %98, %cst_102 {dimension_numbers = #tpu.dot_dimension_numbers<[1], [0], [0], [1], [0, 0, 1, 1], [], []>} : vector<64x8xf32>, vector<8x8xf32>, vector<64x8xf32> -> vector<64x8xf32>
    %100 = arith.addf %91, %99 : vector<64x8xf32>
    %c0_103 = arith.constant 0 : index
    %c0_104 = arith.constant 0 : index
    %101 = vector.load %arg4[%c0_103, %c0_104] : memref<1x8xf32, #tpu.memory_space<vmem>>, vector<1x8xf32>
    %102 = vector.broadcast %101 : vector<1x8xf32> to vector<64x8xf32>
    %103 = arith.addf %100, %102 : vector<64x8xf32>
    %c0_105 = arith.constant 0 : index
    %c6_106 = arith.constant 6 : index
    %c0_107 = arith.constant 0 : index
    %104 = vector.load %arg14[%c0_105, %c6_106, %c0_107] : memref<2x38x8xf32, #tpu.memory_space<vmem>>, vector<1x32x4xf32>
    %105 = vector.shape_cast %104 : vector<1x32x4xf32> to vector<32x4xf32>
    %c1_108 = arith.constant 1 : index
    %c6_109 = arith.constant 6 : index
    %c0_110 = arith.constant 0 : index
    %106 = vector.load %arg14[%c1_108, %c6_109, %c0_110] : memref<2x38x8xf32, #tpu.memory_space<vmem>>, vector<1x32x4xf32>
    %107 = vector.shape_cast %106 : vector<1x32x4xf32> to vector<32x4xf32>
    %108 = tpu.concatenate %105, %107 in 0 : vector<32x4xf32>, vector<32x4xf32> -> vector<64x4xf32>
    %c0_111 = arith.constant 0 : index
    %c0_112 = arith.constant 0 : index
    %109 = vector.load %arg5[%c0_111, %c0_112] : memref<4x8xf32, #tpu.memory_space<vmem>>, vector<4x8xf32>
    %cst_113 = arith.constant dense<0.000000e+00> : vector<64x8xf32>
    %110 = tpu.matmul %108, %109, %cst_113 {dimension_numbers = #tpu.dot_dimension_numbers<[1], [0], [0], [1], [0, 0, 1, 1], [], []>} : vector<64x4xf32>, vector<4x8xf32>, vector<64x8xf32> -> vector<64x8xf32>
    %c0_114 = arith.constant 0 : index
    %c0_115 = arith.constant 0 : index
    %111 = vector.load %arg6[%c0_114, %c0_115] : memref<1x8xf32, #tpu.memory_space<vmem>>, vector<1x8xf32>
    %112 = vector.broadcast %111 : vector<1x8xf32> to vector<64x8xf32>
    %113 = arith.addf %110, %112 : vector<64x8xf32>
    %114 = arith.addf %103, %113 : vector<64x8xf32>
    %cst_116 = arith.constant 0.000000e+00 : f32
    %115 = vector.broadcast %cst_116 : f32 to vector<64x8xf32>
    %116 = arith.maximumf %114, %115 : vector<64x8xf32>
    %117 = vector.extract_strided_slice %116 {offsets = [0, 0], sizes = [32, 8], strides = [1, 1]} : vector<64x8xf32> to vector<32x8xf32>
    %c0_117 = arith.constant 0 : index
    %c6_118 = arith.constant 6 : index
    %c0_119 = arith.constant 0 : index
    %118 = vector.load %arg14[%c0_117, %c6_118, %c0_119] : memref<2x38x8xf32, #tpu.memory_space<vmem>>, vector<1x32x8xf32>
    %119 = vector.shape_cast %118 : vector<1x32x8xf32> to vector<32x8xf32>
    %120 = vector.shape_cast %117 : vector<32x8xf32> to vector<1x32x8xf32>
    tpu.vector_store %arg14[%c0_117, %c6_118, %c0_119], %120 {strides = array<i32>} : memref<2x38x8xf32, #tpu.memory_space<vmem>>, vector<1x32x8xf32>,
    %121 = vector.extract_strided_slice %116 {offsets = [32, 0], sizes = [32, 8], strides = [1, 1]} : vector<64x8xf32> to vector<32x8xf32>
    %c1_120 = arith.constant 1 : index
    %c6_121 = arith.constant 6 : index
    %c0_122 = arith.constant 0 : index
    %122 = vector.load %arg14[%c1_120, %c6_121, %c0_122] : memref<2x38x8xf32, #tpu.memory_space<vmem>>, vector<1x32x8xf32>
    %123 = vector.shape_cast %122 : vector<1x32x8xf32> to vector<32x8xf32>
    %124 = vector.shape_cast %121 : vector<32x8xf32> to vector<1x32x8xf32>
    tpu.vector_store %arg14[%c1_120, %c6_121, %c0_122], %124 {strides = array<i32>} : memref<2x38x8xf32, #tpu.memory_space<vmem>>, vector<1x32x8xf32>,
    %cst_123 = arith.constant 0.000000e+00 : f32
    %125 = vector.broadcast %cst_123 : f32 to vector<64x8xf32>
    %c0_124 = arith.constant 0 : index
    %c0_125 = arith.constant 0 : index
    %c0_126 = arith.constant 0 : index
    %126 = vector.load %arg14[%c0_124, %c0_125, %c0_126] : memref<2x38x8xf32, #tpu.memory_space<vmem>>, vector<1x32x8xf32>
    %127 = vector.shape_cast %126 : vector<1x32x8xf32> to vector<32x8xf32>
    %c1_127 = arith.constant 1 : index
    %c0_128 = arith.constant 0 : index
    %c0_129 = arith.constant 0 : index
    %128 = vector.load %arg14[%c1_127, %c0_128, %c0_129] : memref<2x38x8xf32, #tpu.memory_space<vmem>>, vector<1x32x8xf32>
    %129 = vector.shape_cast %128 : vector<1x32x8xf32> to vector<32x8xf32>
    %130 = tpu.concatenate %127, %129 in 0 : vector<32x8xf32>, vector<32x8xf32> -> vector<64x8xf32>
    %c0_130 = arith.constant 0 : index
    %c0_131 = arith.constant 0 : index
    %c0_132 = arith.constant 0 : index
    %131 = vector.load %arg7[%c0_130, %c0_131, %c0_132] : memref<4x8x8xf32, #tpu.memory_space<vmem>>, vector<1x8x8xf32>
    %132 = vector.shape_cast %131 : vector<1x8x8xf32> to vector<8x8xf32>
    %cst_133 = arith.constant dense<0.000000e+00> : vector<64x8xf32>
    %133 = tpu.matmul %130, %132, %cst_133 {dimension_numbers = #tpu.dot_dimension_numbers<[1], [0], [0], [1], [0, 0, 1, 1], [], []>} : vector<64x8xf32>, vector<8x8xf32>, vector<64x8xf32> -> vector<64x8xf32>
    %134 = arith.addf %125, %133 : vector<64x8xf32>
    %c0_134 = arith.constant 0 : index
    %c2_135 = arith.constant 2 : index
    %c0_136 = arith.constant 0 : index
    %135 = vector.load %arg14[%c0_134, %c2_135, %c0_136] : memref<2x38x8xf32, #tpu.memory_space<vmem>>, vector<1x32x8xf32>
    %136 = vector.shape_cast %135 : vector<1x32x8xf32> to vector<32x8xf32>
    %c1_137 = arith.constant 1 : index
    %c2_138 = arith.constant 2 : index
    %c0_139 = arith.constant 0 : index
    %137 = vector.load %arg14[%c1_137, %c2_138, %c0_139] : memref<2x38x8xf32, #tpu.memory_space<vmem>>, vector<1x32x8xf32>
    %138 = vector.shape_cast %137 : vector<1x32x8xf32> to vector<32x8xf32>
    %139 = tpu.concatenate %136, %138 in 0 : vector<32x8xf32>, vector<32x8xf32> -> vector<64x8xf32>
    %c1_140 = arith.constant 1 : index
    %c0_141 = arith.constant 0 : index
    %c0_142 = arith.constant 0 : index
    %140 = vector.load %arg7[%c1_140, %c0_141, %c0_142] : memref<4x8x8xf32, #tpu.memory_space<vmem>>, vector<1x8x8xf32>
    %141 = vector.shape_cast %140 : vector<1x8x8xf32> to vector<8x8xf32>
    %cst_143 = arith.constant dense<0.000000e+00> : vector<64x8xf32>
    %142 = tpu.matmul %139, %141, %cst_143 {dimension_numbers = #tpu.dot_dimension_numbers<[1], [0], [0], [1], [0, 0, 1, 1], [], []>} : vector<64x8xf32>, vector<8x8xf32>, vector<64x8xf32> -> vector<64x8xf32>
    %143 = arith.addf %134, %142 : vector<64x8xf32>
    %c0_144 = arith.constant 0 : index
    %c4_145 = arith.constant 4 : index
    %c0_146 = arith.constant 0 : index
    %144 = vector.load %arg14[%c0_144, %c4_145, %c0_146] : memref<2x38x8xf32, #tpu.memory_space<vmem>>, vector<1x32x8xf32>
    %145 = vector.shape_cast %144 : vector<1x32x8xf32> to vector<32x8xf32>
    %c1_147 = arith.constant 1 : index
    %c4_148 = arith.constant 4 : index
    %c0_149 = arith.constant 0 : index
    %146 = vector.load %arg14[%c1_147, %c4_148, %c0_149] : memref<2x38x8xf32, #tpu.memory_space<vmem>>, vector<1x32x8xf32>
    %147 = vector.shape_cast %146 : vector<1x32x8xf32> to vector<32x8xf32>
    %148 = tpu.concatenate %145, %147 in 0 : vector<32x8xf32>, vector<32x8xf32> -> vector<64x8xf32>
    %c2_150 = arith.constant 2 : index
    %c0_151 = arith.constant 0 : index
    %c0_152 = arith.constant 0 : index
    %149 = vector.load %arg7[%c2_150, %c0_151, %c0_152] : memref<4x8x8xf32, #tpu.memory_space<vmem>>, vector<1x8x8xf32>
    %150 = vector.shape_cast %149 : vector<1x8x8xf32> to vector<8x8xf32>
    %cst_153 = arith.constant dense<0.000000e+00> : vector<64x8xf32>
    %151 = tpu.matmul %148, %150, %cst_153 {dimension_numbers = #tpu.dot_dimension_numbers<[1], [0], [0], [1], [0, 0, 1, 1], [], []>} : vector<64x8xf32>, vector<8x8xf32>, vector<64x8xf32> -> vector<64x8xf32>
    %152 = arith.addf %143, %151 : vector<64x8xf32>
    %c0_154 = arith.constant 0 : index
    %c6_155 = arith.constant 6 : index
    %c0_156 = arith.constant 0 : index
    %153 = vector.load %arg14[%c0_154, %c6_155, %c0_156] : memref<2x38x8xf32, #tpu.memory_space<vmem>>, vector<1x32x8xf32>
    %154 = vector.shape_cast %153 : vector<1x32x8xf32> to vector<32x8xf32>
    %c1_157 = arith.constant 1 : index
    %c6_158 = arith.constant 6 : index
    %c0_159 = arith.constant 0 : index
    %155 = vector.load %arg14[%c1_157, %c6_158, %c0_159] : memref<2x38x8xf32, #tpu.memory_space<vmem>>, vector<1x32x8xf32>
    %156 = vector.shape_cast %155 : vector<1x32x8xf32> to vector<32x8xf32>
    %157 = tpu.concatenate %154, %156 in 0 : vector<32x8xf32>, vector<32x8xf32> -> vector<64x8xf32>
    %c3_160 = arith.constant 3 : index
    %c0_161 = arith.constant 0 : index
    %c0_162 = arith.constant 0 : index
    %158 = vector.load %arg7[%c3_160, %c0_161, %c0_162] : memref<4x8x8xf32, #tpu.memory_space<vmem>>, vector<1x8x8xf32>
    %159 = vector.shape_cast %158 : vector<1x8x8xf32> to vector<8x8xf32>
    %cst_163 = arith.constant dense<0.000000e+00> : vector<64x8xf32>
    %160 = tpu.matmul %157, %159, %cst_163 {dimension_numbers = #tpu.dot_dimension_numbers<[1], [0], [0], [1], [0, 0, 1, 1], [], []>} : vector<64x8xf32>, vector<8x8xf32>, vector<64x8xf32> -> vector<64x8xf32>
    %161 = arith.addf %152, %160 : vector<64x8xf32>
    %c0_164 = arith.constant 0 : index
    %c0_165 = arith.constant 0 : index
    %162 = vector.load %arg8[%c0_164, %c0_165] : memref<1x8xf32, #tpu.memory_space<vmem>>, vector<1x8xf32>
    %163 = vector.broadcast %162 : vector<1x8xf32> to vector<64x8xf32>
    %164 = arith.addf %161, %163 : vector<64x8xf32>
    %cst_166 = arith.constant 0.000000e+00 : f32
    %165 = vector.broadcast %cst_166 : f32 to vector<64x8xf32>
    %166 = arith.maximumf %164, %165 : vector<64x8xf32>
    %167 = vector.extract_strided_slice %166 {offsets = [0, 0], sizes = [32, 8], strides = [1, 1]} : vector<64x8xf32> to vector<32x8xf32>
    %c0_167 = arith.constant 0 : index
    %c6_168 = arith.constant 6 : index
    %c0_169 = arith.constant 0 : index
    %168 = vector.load %arg15[%c0_167, %c6_168, %c0_169] : memref<2x38x8xf32, #tpu.memory_space<vmem>>, vector<1x32x8xf32>
    %169 = vector.shape_cast %168 : vector<1x32x8xf32> to vector<32x8xf32>
    %170 = vector.shape_cast %167 : vector<32x8xf32> to vector<1x32x8xf32>
    tpu.vector_store %arg15[%c0_167, %c6_168, %c0_169], %170 {strides = array<i32>} : memref<2x38x8xf32, #tpu.memory_space<vmem>>, vector<1x32x8xf32>,
    %171 = vector.extract_strided_slice %166 {offsets = [32, 0], sizes = [32, 8], strides = [1, 1]} : vector<64x8xf32> to vector<32x8xf32>
    %c1_170 = arith.constant 1 : index
    %c6_171 = arith.constant 6 : index
    %c0_172 = arith.constant 0 : index
    %172 = vector.load %arg15[%c1_170, %c6_171, %c0_172] : memref<2x38x8xf32, #tpu.memory_space<vmem>>, vector<1x32x8xf32>
    %173 = vector.shape_cast %172 : vector<1x32x8xf32> to vector<32x8xf32>
    %174 = vector.shape_cast %171 : vector<32x8xf32> to vector<1x32x8xf32>
    tpu.vector_store %arg15[%c1_170, %c6_171, %c0_172], %174 {strides = array<i32>} : memref<2x38x8xf32, #tpu.memory_space<vmem>>, vector<1x32x8xf32>,
    %cst_173 = arith.constant 0.000000e+00 : f32
    %175 = vector.broadcast %cst_173 : f32 to vector<64x8xf32>
    %c0_174 = arith.constant 0 : index
    %c0_175 = arith.constant 0 : index
    %c0_176 = arith.constant 0 : index
    %176 = vector.load %arg15[%c0_174, %c0_175, %c0_176] : memref<2x38x8xf32, #tpu.memory_space<vmem>>, vector<1x32x8xf32>
    %177 = vector.shape_cast %176 : vector<1x32x8xf32> to vector<32x8xf32>
    %c1_177 = arith.constant 1 : index
    %c0_178 = arith.constant 0 : index
    %c0_179 = arith.constant 0 : index
    %178 = vector.load %arg15[%c1_177, %c0_178, %c0_179] : memref<2x38x8xf32, #tpu.memory_space<vmem>>, vector<1x32x8xf32>
    %179 = vector.shape_cast %178 : vector<1x32x8xf32> to vector<32x8xf32>
    %180 = tpu.concatenate %177, %179 in 0 : vector<32x8xf32>, vector<32x8xf32> -> vector<64x8xf32>
    %c0_180 = arith.constant 0 : index
    %c0_181 = arith.constant 0 : index
    %c0_182 = arith.constant 0 : index
    %181 = vector.load %arg9[%c0_180, %c0_181, %c0_182] : memref<4x8x8xf32, #tpu.memory_space<vmem>>, vector<1x8x8xf32>
    %182 = vector.shape_cast %181 : vector<1x8x8xf32> to vector<8x8xf32>
    %cst_183 = arith.constant dense<0.000000e+00> : vector<64x8xf32>
    %183 = tpu.matmul %180, %182, %cst_183 {dimension_numbers = #tpu.dot_dimension_numbers<[1], [0], [0], [1], [0, 0, 1, 1], [], []>} : vector<64x8xf32>, vector<8x8xf32>, vector<64x8xf32> -> vector<64x8xf32>
    %184 = arith.addf %175, %183 : vector<64x8xf32>
    %c0_184 = arith.constant 0 : index
    %c2_185 = arith.constant 2 : index
    %c0_186 = arith.constant 0 : index
    %185 = vector.load %arg15[%c0_184, %c2_185, %c0_186] : memref<2x38x8xf32, #tpu.memory_space<vmem>>, vector<1x32x8xf32>
    %186 = vector.shape_cast %185 : vector<1x32x8xf32> to vector<32x8xf32>
    %c1_187 = arith.constant 1 : index
    %c2_188 = arith.constant 2 : index
    %c0_189 = arith.constant 0 : index
    %187 = vector.load %arg15[%c1_187, %c2_188, %c0_189] : memref<2x38x8xf32, #tpu.memory_space<vmem>>, vector<1x32x8xf32>
    %188 = vector.shape_cast %187 : vector<1x32x8xf32> to vector<32x8xf32>
    %189 = tpu.concatenate %186, %188 in 0 : vector<32x8xf32>, vector<32x8xf32> -> vector<64x8xf32>
    %c1_190 = arith.constant 1 : index
    %c0_191 = arith.constant 0 : index
    %c0_192 = arith.constant 0 : index
    %190 = vector.load %arg9[%c1_190, %c0_191, %c0_192] : memref<4x8x8xf32, #tpu.memory_space<vmem>>, vector<1x8x8xf32>
    %191 = vector.shape_cast %190 : vector<1x8x8xf32> to vector<8x8xf32>
    %cst_193 = arith.constant dense<0.000000e+00> : vector<64x8xf32>
    %192 = tpu.matmul %189, %191, %cst_193 {dimension_numbers = #tpu.dot_dimension_numbers<[1], [0], [0], [1], [0, 0, 1, 1], [], []>} : vector<64x8xf32>, vector<8x8xf32>, vector<64x8xf32> -> vector<64x8xf32>
    %193 = arith.addf %184, %192 : vector<64x8xf32>
    %c0_194 = arith.constant 0 : index
    %c4_195 = arith.constant 4 : index
    %c0_196 = arith.constant 0 : index
    %194 = vector.load %arg15[%c0_194, %c4_195, %c0_196] : memref<2x38x8xf32, #tpu.memory_space<vmem>>, vector<1x32x8xf32>
    %195 = vector.shape_cast %194 : vector<1x32x8xf32> to vector<32x8xf32>
    %c1_197 = arith.constant 1 : index
    %c4_198 = arith.constant 4 : index
    %c0_199 = arith.constant 0 : index
    %196 = vector.load %arg15[%c1_197, %c4_198, %c0_199] : memref<2x38x8xf32, #tpu.memory_space<vmem>>, vector<1x32x8xf32>
    %197 = vector.shape_cast %196 : vector<1x32x8xf32> to vector<32x8xf32>
    %198 = tpu.concatenate %195, %197 in 0 : vector<32x8xf32>, vector<32x8xf32> -> vector<64x8xf32>
    %c2_200 = arith.constant 2 : index
    %c0_201 = arith.constant 0 : index
    %c0_202 = arith.constant 0 : index
    %199 = vector.load %arg9[%c2_200, %c0_201, %c0_202] : memref<4x8x8xf32, #tpu.memory_space<vmem>>, vector<1x8x8xf32>
    %200 = vector.shape_cast %199 : vector<1x8x8xf32> to vector<8x8xf32>
    %cst_203 = arith.constant dense<0.000000e+00> : vector<64x8xf32>
    %201 = tpu.matmul %198, %200, %cst_203 {dimension_numbers = #tpu.dot_dimension_numbers<[1], [0], [0], [1], [0, 0, 1, 1], [], []>} : vector<64x8xf32>, vector<8x8xf32>, vector<64x8xf32> -> vector<64x8xf32>
    %202 = arith.addf %193, %201 : vector<64x8xf32>
    %c0_204 = arith.constant 0 : index
    %c6_205 = arith.constant 6 : index
    %c0_206 = arith.constant 0 : index
    %203 = vector.load %arg15[%c0_204, %c6_205, %c0_206] : memref<2x38x8xf32, #tpu.memory_space<vmem>>, vector<1x32x8xf32>
    %204 = vector.shape_cast %203 : vector<1x32x8xf32> to vector<32x8xf32>
    %c1_207 = arith.constant 1 : index
    %c6_208 = arith.constant 6 : index
    %c0_209 = arith.constant 0 : index
    %205 = vector.load %arg15[%c1_207, %c6_208, %c0_209] : memref<2x38x8xf32, #tpu.memory_space<vmem>>, vector<1x32x8xf32>
    %206 = vector.shape_cast %205 : vector<1x32x8xf32> to vector<32x8xf32>
    %207 = tpu.concatenate %204, %206 in 0 : vector<32x8xf32>, vector<32x8xf32> -> vector<64x8xf32>
    %c3_210 = arith.constant 3 : index
    %c0_211 = arith.constant 0 : index
    %c0_212 = arith.constant 0 : index
    %208 = vector.load %arg9[%c3_210, %c0_211, %c0_212] : memref<4x8x8xf32, #tpu.memory_space<vmem>>, vector<1x8x8xf32>
    %209 = vector.shape_cast %208 : vector<1x8x8xf32> to vector<8x8xf32>
    %cst_213 = arith.constant dense<0.000000e+00> : vector<64x8xf32>
    %210 = tpu.matmul %207, %209, %cst_213 {dimension_numbers = #tpu.dot_dimension_numbers<[1], [0], [0], [1], [0, 0, 1, 1], [], []>} : vector<64x8xf32>, vector<8x8xf32>, vector<64x8xf32> -> vector<64x8xf32>
    %211 = arith.addf %202, %210 : vector<64x8xf32>
    %c0_214 = arith.constant 0 : index
    %c0_215 = arith.constant 0 : index
    %212 = vector.load %arg10[%c0_214, %c0_215] : memref<1x8xf32, #tpu.memory_space<vmem>>, vector<1x8xf32>
    %213 = vector.broadcast %212 : vector<1x8xf32> to vector<64x8xf32>
    %214 = arith.addf %211, %213 : vector<64x8xf32>
    %c0_216 = arith.constant 0 : index
    %c6_217 = arith.constant 6 : index
    %c0_218 = arith.constant 0 : index
    %215 = vector.load %arg14[%c0_216, %c6_217, %c0_218] : memref<2x38x8xf32, #tpu.memory_space<vmem>>, vector<1x32x8xf32>
    %216 = vector.shape_cast %215 : vector<1x32x8xf32> to vector<32x8xf32>
    %c1_219 = arith.constant 1 : index
    %c6_220 = arith.constant 6 : index
    %c0_221 = arith.constant 0 : index
    %217 = vector.load %arg14[%c1_219, %c6_220, %c0_221] : memref<2x38x8xf32, #tpu.memory_space<vmem>>, vector<1x32x8xf32>
    %218 = vector.shape_cast %217 : vector<1x32x8xf32> to vector<32x8xf32>
    %219 = tpu.concatenate %216, %218 in 0 : vector<32x8xf32>, vector<32x8xf32> -> vector<64x8xf32>
    %220 = arith.addf %214, %219 : vector<64x8xf32>
    %cst_222 = arith.constant 0.000000e+00 : f32
    %221 = vector.broadcast %cst_222 : f32 to vector<64x8xf32>
    %222 = arith.maximumf %220, %221 : vector<64x8xf32>
    %c0_223 = arith.constant 0 : index
    %c0_224 = arith.constant 0 : index
    %223 = vector.load %arg11[%c0_223, %c0_224] : memref<8x16xf32, #tpu.memory_space<vmem>>, vector<8x16xf32>
    %c0_225 = arith.constant 0 : index
    %c0_226 = arith.constant 0 : index
    %224 = vector.load %arg12[%c0_225, %c0_226] : memref<1x16xf32, #tpu.memory_space<vmem>>, vector<1x16xf32>
    %225 = vector.extract_strided_slice %222 {offsets = [31, 0], sizes = [1, 8], strides = [1, 1]} : vector<64x8xf32> to vector<1x8xf32>
    %cst_227 = arith.constant dense<0.000000e+00> : vector<1x16xf32>
    %226 = tpu.matmul %225, %223, %cst_227 {dimension_numbers = #tpu.dot_dimension_numbers<[1], [0], [0], [1], [0, 0, 1, 1], [], []>} : vector<1x8xf32>, vector<8x16xf32>, vector<1x16xf32> -> vector<1x16xf32>
    %227 = arith.addf %226, %224 : vector<1x16xf32>
    %c0_228 = arith.constant 0 : index
    %c0_229 = arith.constant 0 : index
    %228 = vector.load %arg13[%c0_228, %c0_229] : memref<2x16xf32, #tpu.memory_space<vmem>>, vector<1x16xf32>
    tpu.vector_store %arg13[%c0_228, %c0_229], %227 {strides = array<i32>} : memref<2x16xf32, #tpu.memory_space<vmem>>, vector<1x16xf32>,
    %229 = vector.extract_strided_slice %222 {offsets = [63, 0], sizes = [1, 8], strides = [1, 1]} : vector<64x8xf32> to vector<1x8xf32>
    %cst_230 = arith.constant dense<0.000000e+00> : vector<1x16xf32>
    %230 = tpu.matmul %229, %223, %cst_230 {dimension_numbers = #tpu.dot_dimension_numbers<[1], [0], [0], [1], [0, 0, 1, 1], [], []>} : vector<1x8xf32>, vector<8x16xf32>, vector<1x16xf32> -> vector<1x16xf32>
    %231 = arith.addf %230, %224 : vector<1x16xf32>
    %c1_231 = arith.constant 1 : index
    %c0_232 = arith.constant 0 : index
    %232 = vector.load %arg13[%c1_231, %c0_232] : memref<2x16xf32, #tpu.memory_space<vmem>>, vector<1x16xf32>
    tpu.vector_store %arg13[%c1_231, %c0_232], %231 {strides = array<i32>} : memref<2x16xf32, #tpu.memory_space<vmem>>, vector<1x16xf32>,
    return
  }
}

</mosaic_0001>

<bundles_post_ra>
// kernel: tpu_custom_call.1
= control target key start
LH: loop header
LB: loop body
LE: loop exit
PB: predicated region body
PF: predicated region fallthrough
CT: control target
= control target key end

     0   :  { %18 = vsyncpa [#allocation5], 0  ;;  %s4107_s0 = inlined_call_operand.vmem [shape: f32[2,32,4], index: 0, kind: input, shape index: {}]   ;;  %s4108_s1 = inlined_call_operand.hbm [shape: f32[4,4,8], index: 1, kind: input, shape index: {}]   ;;  %s4109_s2 = inlined_call_operand.vmem [shape: f32[1,8], index: 2, kind: input, shape index: {}]   ;;  %s4110_s3 = inlined_call_operand.vmem [shape: f32[4,8,8], index: 3, kind: input, shape index: {}]   ;;  %s4111_s4 = inlined_call_operand.vmem [shape: f32[1,8], index: 4, kind: input, shape index: {}]   ;;  %s4112_s5 = inlined_call_operand.hbm [shape: f32[4,8], index: 5, kind: input, shape index: {}]   ;;  %s4113_s6 = inlined_call_operand.hbm [shape: f32[1,8], index: 6, kind: input, shape index: {}]   ;;  %s4114_s7 = inlined_call_operand.vmem [shape: f32[4,8,8], index: 7, kind: input, shape index: {}]   ;;  %s4115_s8 = inlined_call_operand.hbm [shape: f32[1,8], index: 8, kind: input, shape index: {}]   ;;  %s4116_s9 = inlined_call_operand.vmem [shape: f32[4,8,8], index: 9, kind: input, shape index: {}]   ;;  %s4117_s10 = inlined_call_operand.vmem [shape: f32[1,8], index: 10, kind: input, shape index: {}]   ;;  %s4118_s11 = inlined_call_operand.vmem [shape: f32[8,16], index: 11, kind: input, shape index: {}]   ;;  %s4119_s12 = inlined_call_operand.vmem [shape: f32[1,16], index: 12, kind: input, shape index: {}]   ;;  %s4120_s13 = inlined_call_operand.hbm [shape: f32[2,16], index: 13, kind: output, shape index: {}]  }
   0x1   :  { %19 = vsyncpa [#allocation8], 0 }
   0x2   :  { %20 = vsyncpa [#allocation11], 0 }
   0x3   :  { %21 = vsyncpa [#allocation6], 0  ;;  %s3622_s25 = smov [#allocation7]   ;;  %s3623_s27 = smov [#allocation4]  }
   0x4   :  { %s48_s26 = sshll.u32 %s3622_s25, 4  ;;  %s29_s28 = sshll.u32 %s3623_s27, 4  ;;  %s49_s26 = int_to_ptr.vmem [resolvable:$true] %s48_s26  ;;  %s3701_s28 = int_to_ptr.vmem [resolvable:$true] %s29_s28 }
   0x5   :  { %s3504_s14 = scalar_lea.hbm %s4112_s5, 64 }
   0x6   :  { %p3505_p0 = scmp.ne.s32.totalorder %s4112_s5, %s3504_s14  ;;  %p3508_p1 = scmp.lt.u32.totalorder %s3504_s14, %s4112_s5 }
   0x8   :  { %p3510_p2 = pnand %p3508_p1, %p3505_p0 }
   0xa   :  { %3513 = shalt.err (!%p3510_p2)
}
   0xb   :  { %s3514_s19 = scalar_lea.vmem %s49_s26, 64  ;;  %p3519_p4 = scmp.lt.s32.totalorder %s49_s26, %s49_s26 }
   0xc   :  { %p3515_p3 = scmp.ne.s32.totalorder %s49_s26, %s3514_s19  ;;  %p3520_p5 = scmp.lt.s32.totalorder %s3514_s19, %s3514_s19 }
   0xe   :  { %p3521_p6 = por %p3520_p5, %p3519_p4 }
  0x10   :  { %p3522_p7 = pnand %p3521_p6, %p3515_p3 }
  0x12   :  { %3525 = shalt.err (!%p3522_p7)
}
  0x13   :  { %51 = dma.hbm_to_vmem [thread:$0]  %s4112_s5, 64, %s49_s26, [#allocation8]  }
  0x14   :  { %s3526_s24 = scalar_lea.hbm %s4108_s1, 256 }
  0x15   :  { %p3527_p8 = scmp.ne.s32.totalorder %s4108_s1, %s3526_s24  ;;  %p3530_p9 = scmp.lt.u32.totalorder %s3526_s24, %s4108_s1 }
  0x17   :  { %p3532_p10 = pnand %p3530_p9, %p3527_p8 }
  0x19   :  { %3535 = shalt.err (!%p3532_p10)
}
  0x1a   :  { %s3536_s14 = scalar_lea.vmem %s3701_s28, 256  ;;  %p3541_p12 = scmp.lt.s32.totalorder %s3701_s28, %s3701_s28 }
  0x1b   :  { %p3537_p11 = scmp.ne.s32.totalorder %s3701_s28, %s3536_s14  ;;  %p3542_p13 = scmp.lt.s32.totalorder %s3536_s14, %s3536_s14 }
  0x1d   :  { %p3543_p0 = por %p3542_p13, %p3541_p12 }
  0x1f   :  { %p3544_p1 = pnand %p3543_p0, %p3537_p11 }
  0x21   :  { %3547 = shalt.err (!%p3544_p1)
}
  0x22   :  { %s3624_s5 = smov 64   ;;  %s3625_s26 = smov 4  }
  0x23   :  { %35 = dma.hbm_to_vmem [thread:$0]  %s4108_s1, 256, %s3701_s28, [#allocation5], %s3624_s5, %s3624_s5, %s3625_s26  }
  0x24   :  { %s3626_s17 = smov [#allocation9]   ;;  %s3627_s19 = smov [#allocation10]  }
  0x25   :  { %s58_s18 = sshll.u32 %s3626_s17, 4  ;;  %s70_s20 = sshll.u32 %s3627_s19, 4  ;;  %s59_s18 = int_to_ptr.vmem [resolvable:$true] %s58_s18  ;;  %s71_s20 = int_to_ptr.vmem [resolvable:$true] %s70_s20 }
  0x26   :  { %s3548_s23 = scalar_lea.hbm %s4113_s6, 16 }
  0x27   :  { %p3549_p2 = scmp.ne.s32.totalorder %s4113_s6, %s3548_s23  ;;  %p3552_p3 = scmp.lt.u32.totalorder %s3548_s23, %s4113_s6 }
  0x29   :  { %p3554_p4 = pnand %p3552_p3, %p3549_p2 }
  0x2b   :  { %3557 = shalt.err (!%p3554_p4)
}
  0x2c   :  { %s3558_s1 = scalar_lea.vmem %s59_s18, 16  ;;  %s3562_s28 = scalar_lea.vmem %s59_s18, 32 }
  0x2d   :  { %p3559_p5 = scmp.ne.s32.totalorder %s59_s18, %s3558_s1  ;;  %p3563_p6 = scmp.lt.s32.totalorder %s59_s18, %s59_s18 }
  0x2e   :  { %p3564_p7 = scmp.lt.s32.totalorder %s3562_s28, %s3558_s1 }
  0x30   :  { %p3565_p8 = por %p3564_p7, %p3563_p6 }
  0x32   :  { %p3566_p9 = pnand %p3565_p8, %p3559_p5 }
  0x34   :  { %3569 = shalt.err (!%p3566_p9)
}
  0x35   :  { %61 = dma.hbm_to_vmem [thread:$0]  %s4113_s6, 16, %s59_s18, [#allocation8]  }
  0x36   :  { %s3570_s15 = scalar_lea.hbm %s4115_s8, 16 }
  0x37   :  { %p3571_p10 = scmp.ne.s32.totalorder %s4115_s8, %s3570_s15  ;;  %p3574_p11 = scmp.lt.u32.totalorder %s3570_s15, %s4115_s8 }
  0x39   :  { %p3576_p12 = pnand %p3574_p11, %p3571_p10 }
  0x3b   :  { %3579 = shalt.err (!%p3576_p12)
}
  0x3c   :  { %s3580_s22 = scalar_lea.vmem %s71_s20, 16  ;;  %s3584_s23 = scalar_lea.vmem %s71_s20, 32 }
  0x3d   :  { %p3581_p13 = scmp.ne.s32.totalorder %s71_s20, %s3580_s22  ;;  %p3585_p0 = scmp.lt.s32.totalorder %s71_s20, %s71_s20 }
  0x3e   :  { %p3586_p1 = scmp.lt.s32.totalorder %s3584_s23, %s3580_s22 }
  0x40   :  { %p3587_p2 = por %p3586_p1, %p3585_p0 }
  0x42   :  { %p3588_p3 = pnand %p3587_p2, %p3581_p13 }
  0x44   :  { %3591 = shalt.err (!%p3588_p3)
}
  0x45   :  { %73 = dma.hbm_to_vmem [thread:$0]  %s4115_s8, 16, %s71_s20, [#allocation11]  }
  0x46   :  { %3614 = dma.done.wait [#allocation5], 256  }
  0x47   :  { %3615 = vsyncadd [#allocation5], 4294967040 }
  0x48   :  { %3616 = dma.done.wait [#allocation8], 80  }
  0x49   :  { %3617 = vsyncadd [#allocation8], 4294967216 }
  0x4a   :  { %3618 = dma.done.wait [#allocation11], 16  }
  0x4b   :  { %3619 = vsyncadd [#allocation11], 4294967280  ;;  %vm94_vm0 = vcmask 64512   ;;  %v3628_v0 = vmov 0.0   ;;  %vm99_vm1 = vcmask 62464   ;;  %vm178_vm2 = vcmask 1043456  }
  0x4c   :  { %95 = vst.msk [vmem:[#allocation2] sm:$0xff] %vm94_vm0, %v3628_v0  ;;  %96 = vst.msk [vmem:[#allocation2 + $0x8] sm:$0xff] %vm94_vm0, %v3628_v0  ;;  %vm120_vm3 = vcmask 31744   ;;  %v153_v1 = vld [vmem:[#allocation4 + $0x4] sm:$0xf]  ;;  %v117_v4 = vld [vmem:[%s4107_s0 + $0x8] sm:$0xff] }
  0x4d   :  { %97 = vst.msk [vmem:[#allocation2 + $0x10] sm:$0xff] %vm94_vm0, %v3628_v0  ;;  %98 = vst.msk [vmem:[#allocation2 + $0x18] sm:$0xff] %vm94_vm0, %v3628_v0  ;;  %v116_v2 = vld [vmem:[%s4107_s0] sm:$0xff]  ;;  %3149 = vmatprep.subr.msk.mxu0 %vm178_vm2, %v153_v1  ;;  %v118_v5 = vld [vmem:[%s4107_s0 + $0x10] sm:$0xff]  ;;  %3397 = vmatprep.subr.msk.mxu1 %vm178_vm2, %v153_v1  ;;  %vm3629_vm4 = vmmov 0   ;;  %vm2737_vm5 = vcmask 122880  }
  0x4e   :  { %101 = vst.msk [vmem:[#allocation2 + $0x28] sm:$0xff] %vm94_vm0, %v3628_v0  ;;  %102 = vst.msk [vmem:[#allocation2 + $0x30] sm:$0xff] %vm94_vm0, %v3628_v0  ;;  %v143_v3 = vld [vmem:[#allocation4] sm:$0xf]  ;;  %v119_v6 = vld [vmem:[%s4107_s0 + $0x18] sm:$0xff]  ;;  %3150 = vmatpush3.msk.msra.mxu0 %vm178_vm2, %v153_v1  ;;  %3398 = vmatpush3.msk.msra.mxu1 %vm178_vm2, %v153_v1  ;;  %s3630_s18 = smov [#allocation12]  }
  0x4f   :  { %103 = vst.msk [vmem:[#allocation2 + $0x38] sm:$0xff] %vm94_vm0, %v3628_v0  ;;  %104 = vst.msk [vmem:[#allocation2 + $0x40] sm:$0xff] %vm94_vm0, %v3628_v0  ;;  %v2831_v7 = vld [vmem:[%s4107_s0 + $0x20] sm:$0xff]  ;;  %v2832_v8 = vld [vmem:[%s4107_s0 + $0x28] sm:$0xff]  ;;  %3163 = vmatprep.subr.msk.mxu0 %vm178_vm2, %v143_v3 }
  0x50   :  { %106 = vst.msk [vmem:[#allocation3] sm:$0xff] %vm94_vm0, %v3628_v0  ;;  %107 = vst.msk [vmem:[#allocation3 + $0x8] sm:$0xff] %vm94_vm0, %v3628_v0  ;;  %v2833_v9 = vld [vmem:[%s4107_s0 + $0x30] sm:$0xff]  ;;  %v2834_v10 = vld [vmem:[%s4107_s0 + $0x38] sm:$0xff] }
  0x51   :  { %108 = vst.msk [vmem:[#allocation3 + $0x10] sm:$0xff] %vm94_vm0, %v3628_v0  ;;  %109 = vst.msk [vmem:[#allocation3 + $0x18] sm:$0xff] %vm94_vm0, %v3628_v0  ;;  %v428_v14 = vld [vmem:[#allocation4 + $0x8] sm:$0xf]  ;;  %v578_v23 = vld [vmem:[#allocation4 + $0xc] sm:$0xf] }
  0x52   :  { %111 = vst.msk [vmem:[#allocation3 + $0x28] sm:$0xff] %vm94_vm0, %v3628_v0  ;;  %112 = vst.msk [vmem:[#allocation3 + $0x30] sm:$0xff] %vm94_vm0, %v3628_v0  ;;  %v2872_v45 = vld [vmem:[%s4110_s3 + $0x8] sm:$0xff]  ;;  %v759_v46 = vld [vmem:[%s4110_s3] sm:$0xff] }
  0x53   :  { %113 = vst.msk [vmem:[#allocation3 + $0x38] sm:$0xff] %vm94_vm0, %v3628_v0  ;;  %114 = vst.msk [vmem:[#allocation3 + $0x40] sm:$0xff] %vm94_vm0, %v3628_v0  ;;  %3205 = vmatprep.subr.mxu1 %v2872_v45  ;;  %v2871_v49 = vld [vmem:[%s4109_s2] ss:$0 sm:$0xff]  ;;  %s2820_s2 = sshll.u32 %s3630_s18, 4  ;;  %s2821_s2 = int_to_ptr.vmem [resolvable:$true] %s2820_s2 }
  0x54   :  { %100 = vst.msk [vmem:[#allocation2 + $0x20] sm:$0x3f] %vm99_vm1, %v3628_v0  ;;  %105 = vst.msk [vmem:[#allocation2 + $0x48] sm:$0x3f] %vm99_vm1, %v3628_v0  ;;  %s3592_s8 = scalar_lea.vmem %s2821_s2, 32  ;;  %p3597_p5 = scmp.lt.s32.totalorder %s2821_s2, %s2821_s2 }
  0x55   :  { %110 = vst.msk [vmem:[#allocation3 + $0x20] sm:$0x3f] %vm99_vm1, %v3628_v0  ;;  %115 = vst.msk [vmem:[#allocation3 + $0x48] sm:$0x3f] %vm99_vm1, %v3628_v0  ;;  %p3593_p4 = scmp.ne.s32.totalorder %s2821_s2, %s3592_s8  ;;  %p3598_p6 = scmp.lt.s32.totalorder %s3592_s8, %s3592_s8 }
  0x56   :  { %121 = vst.msk [vmem:[#allocation2 + $0x6] sm:$0xff] %vm120_vm3, %v116_v2  ;;  %122 = vst.msk [vmem:[#allocation2 + $0xe] sm:$0xff] %vm120_vm3, %v117_v4 }
  0x57   :  { %123 = vst.msk [vmem:[#allocation2 + $0x16] sm:$0xff] %vm120_vm3, %v118_v5  ;;  %124 = vst.msk [vmem:[#allocation2 + $0x1e] sm:$0xff] %vm120_vm3, %v119_v6  ;;  %p3599_p7 = por %p3598_p6, %p3597_p5 }
  0x58   :  { %131 = vst.msk [vmem:[#allocation2 + $0x2e] sm:$0xff] %vm120_vm3, %v2831_v7  ;;  %132 = vst.msk [vmem:[#allocation2 + $0x36] sm:$0xff] %vm120_vm3, %v2832_v8 }
  0x59   :  { %133 = vst.msk [vmem:[#allocation2 + $0x3e] sm:$0xff] %vm120_vm3, %v2833_v9  ;;  %134 = vst.msk [vmem:[#allocation2 + $0x46] sm:$0xff] %vm120_vm3, %v2834_v10  ;;  %p3600_p8 = pnand %p3599_p7, %p3593_p4 }
  0x5d   :  { %v144_v11 = vld [vmem:[#allocation2 + $0x4] sm:$0xff]  ;;  %v145_v12 = vld [vmem:[#allocation2 + $0xc] sm:$0xff] }
  0x5e   :  { %3151 = vmatprep.mubr.msk.f32.mxu0 %vm120_vm3, %v144_v11  ;;  %v146_v13 = vld [vmem:[#allocation2 + $0x14] sm:$0xff]  ;;  %v147_v15 = vld [vmem:[#allocation2 + $0x1c] sm:$0xff]  ;;  %v136_v21 = vld [vmem:[#allocation2 + $0xb] sm:$0xff] }
  0x5f   :  { %3152 = vmatmul.mubr.msk.f32.vlgmr.msra.gmra.mrb[0].mxu0 %vm120_vm3, %v145_v12  ;;  %v148_v16 = vld [vmem:[#allocation2 + $0x2c] sm:$0xff]  ;;  %v149_v17 = vld [vmem:[#allocation2 + $0x34] sm:$0xff]  ;;  %v135_v18 = vld [vmem:[#allocation2 + $0x3] sm:$0xff] }
  0x60   :  { %3164 = vmatpush3.msk.msra.mxu0 %vm178_vm2, %v143_v3  ;;  %3154 = vmatprep.mubr.msk.f32.mxu0 %vm120_vm3, %v146_v13  ;;  %v150_v19 = vld [vmem:[#allocation2 + $0x3c] sm:$0xff]  ;;  %v151_v20 = vld [vmem:[#allocation2 + $0x44] sm:$0xff]  ;;  %v137_v22 = vld [vmem:[#allocation2 + $0x13] sm:$0xff] }
  0x61   :  { %3177 = vmatprep.subr.msk.mxu0 %vm178_vm2, %v428_v14  ;;  %3160 = vmatprep.mubr.msk.f32.mxu1 %vm120_vm3, %v150_v19  ;;  %v138_v24 = vld [vmem:[#allocation2 + $0x1b] sm:$0xff]  ;;  %v139_v25 = vld [vmem:[#allocation2 + $0x2b] sm:$0xff]  ;;  %v140_v26 = vld [vmem:[#allocation2 + $0x33] sm:$0xff] }
  0x62   :  { %3161 = vmatmul.mubr.msk.f32.vlgmr.msra.gmra.mrb[0].mxu1 %vm120_vm3, %v151_v20  ;;  %v141_v27 = vld [vmem:[#allocation2 + $0x3b] sm:$0xff]  ;;  %v142_v28 = vld [vmem:[#allocation2 + $0x43] sm:$0xff]  ;;  %v420_v30 = vld [vmem:[#allocation2 + $0xd] sm:$0xff] }
  0x63   :  { %3155 = vmatmul.mubr.msk.f32.gmra.mrb[2].mxu0 %vm120_vm3, %v147_v15  ;;  %v419_v29 = vld [vmem:[#allocation2 + $0x5] sm:$0xff]  ;;  %v421_v31 = vld [vmem:[#allocation2 + $0x15] sm:$0xff]  ;;  %v422_v32 = vld [vmem:[#allocation2 + $0x1d] sm:$0xff]  ;;  %3206 = vmatpush3.msra.mxu1 %v2872_v45 }
  0x64   :  { %3157 = vmatprep.mubr.msk.f32.mxu0 %vm120_vm3, %v148_v16  ;;  %v423_v33 = vld [vmem:[#allocation2 + $0x2d] sm:$0xff]  ;;  %v424_v34 = vld [vmem:[#allocation2 + $0x35] sm:$0xff]  ;;  %v425_v35 = vld [vmem:[#allocation2 + $0x3d] sm:$0xff]  ;;  %3219 = vmatprep.subr.mxu1 %v759_v46 }
  0x65   :  { %v426_v36 = vld [vmem:[#allocation2 + $0x45] sm:$0xff]  ;;  %v3862_v38 = vld [vmem:[#allocation2 + $0xe] sm:$0xff]  ;;  %v3864_v39 = vld [vmem:[#allocation2 + $0x16] sm:$0xff] }
  0x66   :  { %v3857_v37 = vld [vmem:[#allocation2 + $0x6] sm:$0xff]  ;;  %v3870_v40 = vld [vmem:[#allocation2 + $0x1e] sm:$0xff]  ;;  %v3872_v41 = vld [vmem:[#allocation2 + $0x2e] sm:$0xff] }
  0x67   :  { %3158 = vmatmul.mubr.msk.f32.gmra.mrb[4].mxu0 %vm120_vm3, %v149_v17  ;;  %v3878_v42 = vld [vmem:[#allocation2 + $0x36] sm:$0xff]  ;;  %v3880_v43 = vld [vmem:[#allocation2 + $0x3e] sm:$0xff]  ;;  %v3886_v44 = vld [vmem:[#allocation2 + $0x46] sm:$0xff] }
  0x68   :  { %3165 = vmatprep.mubr.msk.f32.mxu0 %vm120_vm3, %v135_v18  ;;  %v2889_v11 = vld [vmem:[%s4110_s3 + $0x10] sm:$0xff] }
  0x6b   :  { %3166 = vmatmul.mubr.msk.f32.vlgmr.msra.gmra.mrb[0].mxu0 %vm120_vm3, %v136_v21 }
  0x6c   :  { %3178 = vmatpush3.msk.msra.mxu0 %vm178_vm2, %v428_v14  ;;  %3168 = vmatprep.mubr.msk.f32.mxu0 %vm120_vm3, %v137_v22 }
  0x6d   :  { %3191 = vmatprep.subr.msk.mxu0 %vm178_vm2, %v578_v23 }
  0x6f   :  { %3169 = vmatmul.mubr.msk.f32.gmra.mrb[2].mxu0 %vm120_vm3, %v138_v24  ;;  %v2898_v24 = vld [vmem:[%s4110_s3 + $0x18] sm:$0xff] }
  0x70   :  { %3171 = vmatprep.mubr.msk.f32.mxu0 %vm120_vm3, %v139_v25 }
  0x73   :  { %3172 = vmatmul.mubr.msk.f32.gmra.mrb[4].mxu0 %vm120_vm3, %v140_v26 }
  0x74   :  { %3174 = vmatprep.mubr.msk.f32.mxu0 %vm120_vm3, %v141_v27 }
  0x77   :  { %3175 = vmatmul.mubr.msk.f32.gmra.mrb[6].mxu0 %vm120_vm3, %v142_v28 }
  0x78   :  { %3179 = vmatprep.mubr.msk.f32.mxu0 %vm120_vm3, %v419_v29 }
  0x7b   :  { %3180 = vmatmul.mubr.msk.f32.vlgmr.msra.gmra.mrb[0].mxu0 %vm120_vm3, %v420_v30 }
  0x7c   :  { %3192 = vmatpush3.msk.msra.mxu0 %vm178_vm2, %v578_v23  ;;  %3182 = vmatprep.mubr.msk.f32.mxu0 %vm120_vm3, %v421_v31 }
  0x7f   :  { %3183 = vmatmul.mubr.msk.f32.gmra.mrb[2].mxu0 %vm120_vm3, %v422_v32 }
  0x80   :  { %3185 = vmatprep.mubr.msk.f32.mxu0 %vm120_vm3, %v423_v33  ;;  %v1345_v33 = vld [vmem:[#allocation7] sm:$0xf] }
  0x83   :  { %3186 = vmatmul.mubr.msk.f32.gmra.mrb[4].mxu0 %vm120_vm3, %v424_v34 }
  0x84   :  { %3188 = vmatprep.mubr.msk.f32.mxu0 %vm120_vm3, %v425_v35 }
  0x87   :  { %3189 = vmatmul.mubr.msk.f32.gmra.mrb[6].mxu0 %vm120_vm3, %v426_v36 }
  0x88   :  { %3193 = vmatprep.mubr.msk.f32.mxu0 %vm120_vm3, %v3857_v37 }
  0x8b   :  { %3194 = vmatmul.mubr.msk.f32.vlgmr.msra.gmra.mrb[0].mxu0 %vm120_vm3, %v3862_v38 }
  0x8c   :  { %3196 = vmatprep.mubr.msk.f32.mxu0 %vm120_vm3, %v3864_v39 }
  0x8f   :  { %3197 = vmatmul.mubr.msk.f32.gmra.mrb[2].mxu0 %vm120_vm3, %v3870_v40 }
  0x90   :  { %3199 = vmatprep.mubr.msk.f32.mxu0 %vm120_vm3, %v3872_v41 }
  0x93   :  { %3200 = vmatmul.mubr.msk.f32.gmra.mrb[4].mxu0 %vm120_vm3, %v3878_v42 }
  0x94   :  { %3202 = vmatprep.mubr.msk.f32.mxu0 %vm120_vm3, %v3880_v43 }
  0x97   :  { %3203 = vmatmul.mubr.msk.f32.gmra.mrb[6].mxu0 %vm120_vm3, %v3886_v44 }
 0x135   :  { %v3162_v47 = vpop.f32.mrb[0].mxu1 }
 0x136   :  { %v278_v48 = vpop.f32.mrb[1].mxu1 }
 0x15e   :  { %v3195_v50 = vpop.f32.mrb[0].mxu0 }
 0x15f   :  { %v727_v51 = vadd.f32 %v3195_v50, %v2871_v49  ;;  %v672_v52 = vpop.f32.mrb[1].mxu0 }
 0x160   :  { %v726_v53 = vadd.f32 %v2871_v49, %v672_v52 }
 0x161   :  { %v735_v54 = vmax.f32 %v727_v51, 0.0 }
 0x162   :  { %v734_v55 = vmax.f32 %v726_v53, 0.0  ;;  %v3198_v56 = vpop.f32.mrb[2].mxu0 }
 0x163   :  { %743 = vst.msk [vmem:[#allocation3 + $0xe] sm:$0xff] %vm94_vm0, %v735_v54  ;;  %v729_v57 = vadd.f32 %v3198_v56, %v2871_v49  ;;  %v682_v58 = vpop.f32.mrb[3].mxu0 }
 0x164   :  { %742 = vst.msk [vmem:[#allocation3 + $0x6] sm:$0xff] %vm94_vm0, %v734_v55  ;;  %v728_v59 = vadd.f32 %v2871_v49, %v682_v58 }
 0x165   :  { %v737_v60 = vmax.f32 %v729_v57, 0.0 }
 0x166   :  { %v736_v61 = vmax.f32 %v728_v59, 0.0  ;;  %v3201_v62 = vpop.f32.mrb[4].mxu0 }
 0x167   :  { %745 = vst.msk [vmem:[#allocation3 + $0x1e] sm:$0xff] %vm94_vm0, %v737_v60  ;;  %v731_v63 = vadd.f32 %v3201_v62, %v2871_v49  ;;  %v692_v1 = vpop.f32.mrb[5].mxu0 }
 0x168   :  { %744 = vst.msk [vmem:[#allocation3 + $0x16] sm:$0xff] %vm94_vm0, %v736_v61  ;;  %v730_v2 = vadd.f32 %v2871_v49, %v692_v1 }
 0x169   :  { %v739_v3 = vmax.f32 %v731_v63, 0.0 }
 0x16a   :  { %v738_v4 = vmax.f32 %v730_v2, 0.0  ;;  %v3204_v5 = vpop.f32.mrb[6].mxu0 }
 0x16b   :  { %748 = vst.msk [vmem:[#allocation3 + $0x36] sm:$0xff] %vm94_vm0, %v739_v3  ;;  %v3399_v6 = vadd.f32 %v3204_v5, %v3162_v47  ;;  %v702_v7 = vpop.f32.mrb[7].mxu0  ;;  %v760_v8 = vld [vmem:[#allocation3 + $0x4] sm:$0xff]  ;;  %v761_v9 = vld [vmem:[#allocation3 + $0xc] sm:$0xff] }
 0x16c   :  { %747 = vst.msk [vmem:[#allocation3 + $0x2e] sm:$0xff] %vm94_vm0, %v738_v4  ;;  %v3400_v10 = vadd.f32 %v702_v7, %v278_v48  ;;  %3207 = vmatprep.mubr.msk.f32.mxu1 %vm94_vm0, %v760_v8  ;;  %v751_v22 = vld [vmem:[#allocation3 + $0x3] sm:$0xff]  ;;  %v752_v23 = vld [vmem:[#allocation3 + $0xb] sm:$0xff] }
 0x16d   :  { %v733_v12 = vadd.f32 %v3399_v6, %v2871_v49  ;;  %3208 = vmatmul.mubr.msk.f32.vlgmr.msra.gmra.mrb[2].mxu1 %vm94_vm0, %v761_v9  ;;  %v1028_v31 = vld [vmem:[#allocation3 + $0x5] sm:$0xff]  ;;  %v1029_v32 = vld [vmem:[#allocation3 + $0xd] sm:$0xff] }
 0x16e   :  { %v732_v13 = vadd.f32 %v3400_v10, %v2871_v49  ;;  %3220 = vmatpush3.msra.mxu1 %v759_v46  ;;  %v1175_v48 = vld [vmem:[#allocation3 + $0x6] sm:$0xff]  ;;  %v1176_v49 = vld [vmem:[#allocation3 + $0xe] sm:$0xff]  ;;  %v1178_v51 = vld [vmem:[#allocation3 + $0x1e] sm:$0xff] }
 0x16f   :  { %v741_v14 = vmax.f32 %v733_v12, 0.0  ;;  %v762_v15 = vld [vmem:[#allocation3 + $0x14] sm:$0xff]  ;;  %v763_v16 = vld [vmem:[#allocation3 + $0x1c] sm:$0xff]  ;;  %3233 = vmatprep.subr.mxu1 %v2889_v11 }
 0x170   :  { %v740_v17 = vmax.f32 %v732_v13, 0.0  ;;  %3210 = vmatprep.mubr.msk.f32.mxu1 %vm94_vm0, %v762_v15  ;;  %v753_v25 = vld [vmem:[#allocation3 + $0x13] sm:$0xff]  ;;  %v754_v26 = vld [vmem:[#allocation3 + $0x1b] sm:$0xff] }
 0x171   :  { %750 = vst.msk [vmem:[#allocation3 + $0x46] sm:$0xff] %vm94_vm0, %v741_v14  ;;  %3211 = vmatmul.mubr.msk.f32.gmra.mrb[4].mxu1 %vm94_vm0, %v763_v16  ;;  %v1030_v34 = vld [vmem:[#allocation3 + $0x15] sm:$0xff]  ;;  %v1031_v35 = vld [vmem:[#allocation3 + $0x1d] sm:$0xff] }
 0x172   :  { %749 = vst.msk [vmem:[#allocation3 + $0x3e] sm:$0xff] %vm94_vm0, %v740_v17  ;;  %v1177_v50 = vld [vmem:[#allocation3 + $0x16] sm:$0xff] }
 0x173   :  { %v764_v18 = vld [vmem:[#allocation3 + $0x2c] sm:$0xff]  ;;  %v765_v19 = vld [vmem:[#allocation3 + $0x34] sm:$0xff] }
 0x174   :  { %3213 = vmatprep.mubr.msk.f32.mxu1 %vm94_vm0, %v764_v18  ;;  %v755_v27 = vld [vmem:[#allocation3 + $0x2b] sm:$0xff]  ;;  %v756_v28 = vld [vmem:[#allocation3 + $0x33] sm:$0xff] }
 0x175   :  { %3214 = vmatmul.mubr.msk.f32.gmra.mrb[6].mxu1 %vm94_vm0, %v765_v19  ;;  %v1032_v36 = vld [vmem:[#allocation3 + $0x2d] sm:$0xff]  ;;  %v1033_v45 = vld [vmem:[#allocation3 + $0x35] sm:$0xff]  ;;  %v2935_v19 = vld [vmem:[%s4114_s7 + $0x10] sm:$0xff] }
 0x176   :  { %v1179_v52 = vld [vmem:[#allocation3 + $0x2e] sm:$0xff]  ;;  %v1180_v53 = vld [vmem:[#allocation3 + $0x36] sm:$0xff] }
 0x178   :  { %v1182_v55 = vld [vmem:[#allocation3 + $0x46] sm:$0xff] }
 0x179   :  { %v766_v20 = vld [vmem:[#allocation3 + $0x3c] sm:$0xff]  ;;  %v767_v21 = vld [vmem:[#allocation3 + $0x44] sm:$0xff] }
 0x17a   :  { %3216 = vmatprep.mubr.msk.f32.mxu1 %vm94_vm0, %v766_v20  ;;  %v757_v29 = vld [vmem:[#allocation3 + $0x3b] sm:$0xff]  ;;  %v758_v30 = vld [vmem:[#allocation3 + $0x43] sm:$0xff] }
 0x17b   :  { %3217 = vmatmul.mubr.msk.f32.gmra.mrb[8].mxu1 %vm94_vm0, %v767_v21  ;;  %v1034_v46 = vld [vmem:[#allocation3 + $0x3d] sm:$0xff]  ;;  %v1035_v47 = vld [vmem:[#allocation3 + $0x45] sm:$0xff] }
 0x17c   :  { %3221 = vmatprep.mubr.msk.f32.mxu1 %vm94_vm0, %v751_v22  ;;  %v1181_v54 = vld [vmem:[#allocation3 + $0x3e] sm:$0xff] }
 0x17f   :  { %3222 = vmatmul.mubr.msk.f32.vlgmr.msra.gmra.mrb[2].mxu1 %vm94_vm0, %v752_v23 }
 0x180   :  { %3234 = vmatpush3.msra.mxu1 %v2889_v11  ;;  %3224 = vmatprep.mubr.msk.f32.mxu1 %vm94_vm0, %v753_v25 }
 0x181   :  { %3247 = vmatprep.subr.mxu1 %v2898_v24 }
 0x183   :  { %3225 = vmatmul.mubr.msk.f32.gmra.mrb[4].mxu1 %vm94_vm0, %v754_v26 }
 0x184   :  { %3227 = vmatprep.mubr.msk.f32.mxu1 %vm94_vm0, %v755_v27 }
 0x187   :  { %3228 = vmatmul.mubr.msk.f32.gmra.mrb[6].mxu1 %vm94_vm0, %v756_v28  ;;  %v2944_v28 = vld [vmem:[%s4114_s7 + $0x18] sm:$0xff] }
 0x188   :  { %3230 = vmatprep.mubr.msk.f32.mxu1 %vm94_vm0, %v757_v29 }
 0x18b   :  { %3231 = vmatmul.mubr.msk.f32.gmra.mrb[8].mxu1 %vm94_vm0, %v758_v30 }
 0x18c   :  { %3235 = vmatprep.mubr.msk.f32.mxu1 %vm94_vm0, %v1028_v31 }
 0x18f   :  { %3236 = vmatmul.mubr.msk.f32.vlgmr.msra.gmra.mrb[2].mxu1 %vm94_vm0, %v1029_v32 }
 0x190   :  { %3248 = vmatpush3.msra.mxu1 %v2898_v24  ;;  %3238 = vmatprep.mubr.msk.f32.mxu1 %vm94_vm0, %v1030_v34 }
 0x191   :  { %3261 = vmatprep.subr.msk.mxu1 %vm178_vm2, %v1345_v33 }
 0x193   :  { %3239 = vmatmul.mubr.msk.f32.gmra.mrb[4].mxu1 %vm94_vm0, %v1031_v35 }
 0x194   :  { %3241 = vmatprep.mubr.msk.f32.mxu1 %vm94_vm0, %v1032_v36 }
 0x197   :  { %3242 = vmatmul.mubr.msk.f32.gmra.mrb[6].mxu1 %vm94_vm0, %v1033_v45 }
 0x198   :  { %3244 = vmatprep.mubr.msk.f32.mxu1 %vm94_vm0, %v1034_v46 }
 0x19b   :  { %3245 = vmatmul.mubr.msk.f32.gmra.mrb[8].mxu1 %vm94_vm0, %v1035_v47 }
 0x19c   :  { %3249 = vmatprep.mubr.msk.f32.mxu1 %vm94_vm0, %v1175_v48 }
 0x19f   :  { %3250 = vmatmul.mubr.msk.f32.vlgmr.msra.gmra.mrb[2].mxu1 %vm94_vm0, %v1176_v49 }
 0x1a0   :  { %3262 = vmatpush3.msk.msra.mxu1 %vm178_vm2, %v1345_v33  ;;  %3252 = vmatprep.mubr.msk.f32.mxu1 %vm94_vm0, %v1177_v50 }
 0x1a3   :  { %3253 = vmatmul.mubr.msk.f32.gmra.mrb[4].mxu1 %vm94_vm0, %v1178_v51 }
 0x1a4   :  { %3255 = vmatprep.mubr.msk.f32.mxu1 %vm94_vm0, %v1179_v52 }
 0x1a7   :  { %3256 = vmatmul.mubr.msk.f32.gmra.mrb[6].mxu1 %vm94_vm0, %v1180_v53 }
 0x1a8   :  { %3258 = vmatprep.mubr.msk.f32.mxu1 %vm94_vm0, %v1181_v54 }
 0x1ab   :  { %3259 = vmatmul.mubr.msk.f32.gmra.mrb[8].mxu1 %vm94_vm0, %v1182_v55 }
 0x1ac   :  { %3263 = vmatprep.mubr.msk.f32.mxu1 %vm120_vm3, %v3857_v37  ;;  %v2918_v37 = vld [vmem:[%s4114_s7 + $0x8] sm:$0xff] }
 0x1ad   :  { %3275 = vmatprep.subr.mxu0 %v2918_v37 }
 0x1ae   :  { %3276 = vmatpush3.msra.mxu0 %v2918_v37 }
 0x1af   :  { %3264 = vmatmul.mubr.msk.f32.vlgmr.msra.gmra.mrb[2].mxu1 %vm120_vm3, %v3862_v38  ;;  %v1517_v38 = vld [vmem:[%s4114_s7] sm:$0xff] }
 0x1b0   :  { %3266 = vmatprep.mubr.msk.f32.mxu1 %vm120_vm3, %v3864_v39  ;;  %3289 = vmatprep.subr.mxu0 %v1517_v38  ;;  %v2954_v39 = vld [vmem:[%s4116_s9 + $0x8] sm:$0xff] }
 0x1b1   :  { %3331 = vmatprep.subr.mxu1 %v2954_v39 }
 0x1b2   :  { %3332 = vmatpush3.msra.mxu1 %v2954_v39 }
 0x1b3   :  { %3267 = vmatmul.mubr.msk.f32.gmra.mrb[4].mxu1 %vm120_vm3, %v3870_v40  ;;  %v2907_v40 = vld [vmem:[%s4111_s4] ss:$0 sm:$0xff] }
 0x1b4   :  { %3269 = vmatprep.mubr.msk.f32.mxu1 %vm120_vm3, %v3872_v41  ;;  %v2908_v41 = vld [vmem:[#allocation9] ss:$0 sm:$0xff] }
 0x1b7   :  { %3270 = vmatmul.mubr.msk.f32.gmra.mrb[6].mxu1 %vm120_vm3, %v3878_v42 }
 0x1b8   :  { %3272 = vmatprep.mubr.msk.f32.mxu1 %vm120_vm3, %v3880_v43 }
 0x1bb   :  { %3273 = vmatmul.mubr.msk.f32.gmra.mrb[8].mxu1 %vm120_vm3, %v3886_v44  ;;  %v3407_v44 = vadd.f32 %v2908_v41, %v2907_v40 }
 0x282   :  { %v3265_v42 = vpop.f32.mrb[2].mxu1 }
 0x283   :  { %v3401_v43 = vadd.f32 %v3265_v42, %v2907_v40  ;;  %v1446_v56 = vpop.f32.mrb[3].mxu1  ;;  %v2953_v42 = vld [vmem:[#allocation10] ss:$0 sm:$0xff] }
 0x284   :  { %v3403_v57 = vadd.f32 %v2907_v40, %v1446_v56  ;;  %v2980_v40 = vld [vmem:[%s4116_s9 + $0x18] sm:$0xff] }
 0x285   :  { %v3402_v58 = vadd.f32 %v3401_v43, %v2908_v41 }
 0x286   :  { %v3404_v59 = vadd.f32 %v3403_v57, %v2908_v41  ;;  %v3268_v60 = vpop.f32.mrb[4].mxu1  ;;  %v2119_v41 = vld [vmem:[%s4116_s9] sm:$0xff] }
 0x287   :  { %v1494_v61 = vmax.f32 %v3402_v58, 0.0  ;;  %v3406_v62 = vadd.f32 %v3407_v44, %v3268_v60  ;;  %v1456_v63 = vpop.f32.mrb[5].mxu1  ;;  %3345 = vmatprep.subr.mxu1 %v2119_v41 }
 0x288   :  { %v1493_v1 = vmax.f32 %v3404_v59, 0.0  ;;  %v3408_v2 = vadd.f32 %v3407_v44, %v1456_v63 }
 0x289   :  { %1502 = vst.msk [vmem:[#allocation2 + $0xe] sm:$0xff] %vm94_vm0, %v1494_v61  ;;  %v1496_v3 = vmax.f32 %v3406_v62, 0.0 }
 0x28a   :  { %1501 = vst.msk [vmem:[#allocation2 + $0x6] sm:$0xff] %vm94_vm0, %v1493_v1  ;;  %v1495_v4 = vmax.f32 %v3408_v2, 0.0  ;;  %v3271_v5 = vpop.f32.mrb[6].mxu1 }
 0x28b   :  { %1504 = vst.msk [vmem:[#allocation2 + $0x1e] sm:$0xff] %vm94_vm0, %v1496_v3  ;;  %v3410_v6 = vadd.f32 %v3407_v44, %v3271_v5  ;;  %v1466_v7 = vpop.f32.mrb[7].mxu1 }
 0x28c   :  { %1503 = vst.msk [vmem:[#allocation2 + $0x16] sm:$0xff] %vm94_vm0, %v1495_v4  ;;  %v3412_v8 = vadd.f32 %v3407_v44, %v1466_v7 }
 0x28d   :  { %v1498_v9 = vmax.f32 %v3410_v6, 0.0 }
 0x28e   :  { %v1497_v10 = vmax.f32 %v3412_v8, 0.0  ;;  %v3274_v11 = vpop.f32.mrb[8].mxu1 }
 0x28f   :  { %1506 = vst.msk [vmem:[#allocation2 + $0x36] sm:$0xff] %vm94_vm0, %v1498_v9  ;;  %v3414_v12 = vadd.f32 %v3407_v44, %v3274_v11  ;;  %v1476_v13 = vpop.f32.mrb[9].mxu1 }
 0x290   :  { %1505 = vst.msk [vmem:[#allocation2 + $0x2e] sm:$0xff] %vm94_vm0, %v1497_v10  ;;  %v3416_v14 = vadd.f32 %v3407_v44, %v1476_v13  ;;  %v1934_v52 = vld [vmem:[#allocation2 + $0xe] sm:$0xff] }
 0x291   :  { %v1500_v15 = vmax.f32 %v3414_v12, 0.0  ;;  %v1518_v16 = vld [vmem:[#allocation2 + $0x2] sm:$0xff]  ;;  %v1519_v17 = vld [vmem:[#allocation2 + $0xa] sm:$0xff] }
 0x292   :  { %v1499_v18 = vmax.f32 %v3416_v14, 0.0  ;;  %3277 = vmatprep.mubr.msk.f32.mxu0 %vm94_vm0, %v1518_v16  ;;  %v1509_v26 = vld [vmem:[#allocation2] sm:$0xff]  ;;  %v1510_v27 = vld [vmem:[#allocation2 + $0x8] sm:$0xff] }
 0x293   :  { %1508 = vst.msk [vmem:[#allocation2 + $0x46] sm:$0xff] %vm94_vm0, %v1500_v15  ;;  %3278 = vmatmul.mubr.msk.f32.vlgmr.msra.gmra.mrb[8].mxu0 %vm94_vm0, %v1519_v17  ;;  %v1520_v20 = vld [vmem:[#allocation2 + $0x12] sm:$0xff]  ;;  %v1521_v21 = vld [vmem:[#allocation2 + $0x1a] sm:$0xff]  ;;  %v1786_v35 = vld [vmem:[#allocation2 + $0x4] sm:$0xff] }
 0x294   :  { %1507 = vst.msk [vmem:[#allocation2 + $0x3e] sm:$0xff] %vm94_vm0, %v1499_v18  ;;  %3290 = vmatpush3.msra.mxu0 %v1517_v38  ;;  %3280 = vmatprep.mubr.msk.f32.mxu0 %vm94_vm0, %v1520_v20  ;;  %v1511_v29 = vld [vmem:[#allocation2 + $0x10] sm:$0xff]  ;;  %v1512_v30 = vld [vmem:[#allocation2 + $0x18] sm:$0xff]  ;;  %v1933_v51 = vld [vmem:[#allocation2 + $0x6] sm:$0xff] }
 0x295   :  { %3303 = vmatprep.subr.mxu0 %v2935_v19  ;;  %v1787_v36 = vld [vmem:[#allocation2 + $0xc] sm:$0xff]  ;;  %v1788_v45 = vld [vmem:[#allocation2 + $0x14] sm:$0xff]  ;;  %v1789_v46 = vld [vmem:[#allocation2 + $0x1c] sm:$0xff] }
 0x296   :  { %v1935_v53 = vld [vmem:[#allocation2 + $0x16] sm:$0xff]  ;;  %v4016_v54 = vld [vmem:[#allocation2 + $0x1e] sm:$0xff] }
 0x297   :  { %3281 = vmatmul.mubr.msk.f32.gmra.mrb[10].mxu0 %vm94_vm0, %v1521_v21  ;;  %v1522_v22 = vld [vmem:[#allocation2 + $0x2a] sm:$0xff]  ;;  %v1523_v23 = vld [vmem:[#allocation2 + $0x32] sm:$0xff] }
 0x298   :  { %3283 = vmatprep.mubr.msk.f32.mxu0 %vm94_vm0, %v1522_v22  ;;  %v1513_v31 = vld [vmem:[#allocation2 + $0x28] sm:$0xff]  ;;  %v1514_v32 = vld [vmem:[#allocation2 + $0x30] sm:$0xff] }
 0x299   :  { %v1790_v47 = vld [vmem:[#allocation2 + $0x2c] sm:$0xff]  ;;  %v1791_v48 = vld [vmem:[#allocation2 + $0x34] sm:$0xff] }
 0x29a   :  { %v1937_v55 = vld [vmem:[#allocation2 + $0x2e] sm:$0xff]  ;;  %v1938_v37 = vld [vmem:[#allocation2 + $0x36] sm:$0xff]  ;;  %v4023_v39 = vld [vmem:[#allocation2 + $0x46] sm:$0xff] }
 0x29b   :  { %3284 = vmatmul.mubr.msk.f32.gmra.mrb[12].mxu0 %vm94_vm0, %v1523_v23  ;;  %v1524_v24 = vld [vmem:[#allocation2 + $0x3a] sm:$0xff]  ;;  %v1525_v25 = vld [vmem:[#allocation2 + $0x42] sm:$0xff]  ;;  %v2971_v17 = vld [vmem:[%s4116_s9 + $0x10] sm:$0xff] }
 0x29c   :  { %3286 = vmatprep.mubr.msk.f32.mxu0 %vm94_vm0, %v1524_v24  ;;  %v1515_v33 = vld [vmem:[#allocation2 + $0x38] sm:$0xff]  ;;  %v1516_v34 = vld [vmem:[#allocation2 + $0x40] sm:$0xff] }
 0x29d   :  { %v1792_v49 = vld [vmem:[#allocation2 + $0x3c] sm:$0xff]  ;;  %v1793_v50 = vld [vmem:[#allocation2 + $0x44] sm:$0xff] }
 0x29e   :  { %v1939_v38 = vld [vmem:[#allocation2 + $0x3e] sm:$0xff] }
 0x29f   :  { %3287 = vmatmul.mubr.msk.f32.gmra.mrb[14].mxu0 %vm94_vm0, %v1525_v25 }
 0x2a0   :  { %3291 = vmatprep.mubr.msk.f32.mxu0 %vm94_vm0, %v1509_v26 }
 0x2a3   :  { %3292 = vmatmul.mubr.msk.f32.vlgmr.msra.gmra.mrb[8].mxu0 %vm94_vm0, %v1510_v27 }
 0x2a4   :  { %3304 = vmatpush3.msra.mxu0 %v2935_v19  ;;  %3294 = vmatprep.mubr.msk.f32.mxu0 %vm94_vm0, %v1511_v29 }
 0x2a5   :  { %3317 = vmatprep.subr.mxu0 %v2944_v28 }
 0x2a7   :  { %3295 = vmatmul.mubr.msk.f32.gmra.mrb[10].mxu0 %vm94_vm0, %v1512_v30 }
 0x2a8   :  { %3297 = vmatprep.mubr.msk.f32.mxu0 %vm94_vm0, %v1513_v31 }
 0x2ab   :  { %3298 = vmatmul.mubr.msk.f32.gmra.mrb[12].mxu0 %vm94_vm0, %v1514_v32 }
 0x2ac   :  { %3300 = vmatprep.mubr.msk.f32.mxu0 %vm94_vm0, %v1515_v33 }
 0x2af   :  { %3301 = vmatmul.mubr.msk.f32.gmra.mrb[14].mxu0 %vm94_vm0, %v1516_v34 }
 0x2b0   :  { %3305 = vmatprep.mubr.msk.f32.mxu0 %vm94_vm0, %v1786_v35 }
 0x2b3   :  { %3306 = vmatmul.mubr.msk.f32.vlgmr.msra.gmra.mrb[8].mxu0 %vm94_vm0, %v1787_v36 }
 0x2b4   :  { %3318 = vmatpush3.msra.mxu0 %v2944_v28  ;;  %3308 = vmatprep.mubr.msk.f32.mxu0 %vm94_vm0, %v1788_v45 }
 0x2b5   :  { %3373 = vmatprep.subr.mxu0 %v2980_v40 }
 0x2b7   :  { %3309 = vmatmul.mubr.msk.f32.gmra.mrb[10].mxu0 %vm94_vm0, %v1789_v46 }
 0x2b8   :  { %3311 = vmatprep.mubr.msk.f32.mxu0 %vm94_vm0, %v1790_v47 }
 0x2bb   :  { %3312 = vmatmul.mubr.msk.f32.gmra.mrb[12].mxu0 %vm94_vm0, %v1791_v48 }
 0x2bc   :  { %3314 = vmatprep.mubr.msk.f32.mxu0 %vm94_vm0, %v1792_v49 }
 0x2bf   :  { %3315 = vmatmul.mubr.msk.f32.gmra.mrb[14].mxu0 %vm94_vm0, %v1793_v50 }
 0x2c0   :  { %3319 = vmatprep.mubr.msk.f32.mxu0 %vm94_vm0, %v1933_v51 }
 0x2c3   :  { %3320 = vmatmul.mubr.msk.f32.vlgmr.msra.gmra.mrb[8].mxu0 %vm94_vm0, %v1934_v52 }
 0x2c4   :  { %3322 = vmatprep.mubr.msk.f32.mxu0 %vm94_vm0, %v1935_v53  ;;  %3374 = vmatpush3.msra.mxu0 %v2980_v40 }
 0x2c7   :  { %3323 = vmatmul.mubr.msk.f32.gmra.mrb[10].mxu0 %vm94_vm0, %v4016_v54 }
 0x2c8   :  { %3325 = vmatprep.mubr.msk.f32.mxu0 %vm94_vm0, %v1937_v55 }
 0x2cb   :  { %3326 = vmatmul.mubr.msk.f32.gmra.mrb[12].mxu0 %vm94_vm0, %v1938_v37 }
 0x2cc   :  { %3328 = vmatprep.mubr.msk.f32.mxu0 %vm94_vm0, %v1939_v38  ;;  %v2661_v38 = vld [vmem:[%s4118_s11] sm:$0xff] }
 0x2cf   :  { %3329 = vmatmul.mubr.msk.f32.gmra.mrb[14].mxu0 %vm94_vm0, %v4023_v39 }
 0x396   :  { %v3321_v43 = vpop.f32.mrb[8].mxu0 }
 0x397   :  { %v2088_v44 = vadd.f32 %v3321_v43, %v2953_v42  ;;  %v2033_v56 = vpop.f32.mrb[9].mxu0 }
 0x398   :  { %v2087_v57 = vadd.f32 %v2953_v42, %v2033_v56 }
 0x399   :  { %v2096_v58 = vmax.f32 %v2088_v44, 0.0 }
 0x39a   :  { %v2095_v59 = vmax.f32 %v2087_v57, 0.0  ;;  %v3324_v60 = vpop.f32.mrb[10].mxu0 }
 0x39b   :  { %2104 = vst.msk [vmem:[#allocation3 + $0xe] sm:$0xff] %vm94_vm0, %v2096_v58  ;;  %v2090_v61 = vadd.f32 %v3324_v60, %v2953_v42  ;;  %v2043_v62 = vpop.f32.mrb[11].mxu0 }
 0x39c   :  { %2103 = vst.msk [vmem:[#allocation3 + $0x6] sm:$0xff] %vm94_vm0, %v2095_v59  ;;  %v2089_v63 = vadd.f32 %v2953_v42, %v2043_v62 }
 0x39d   :  { %v2098_v1 = vmax.f32 %v2090_v61, 0.0 }
 0x39e   :  { %v2097_v2 = vmax.f32 %v2089_v63, 0.0  ;;  %v3327_v3 = vpop.f32.mrb[12].mxu0 }
 0x39f   :  { %2106 = vst.msk [vmem:[#allocation3 + $0x1e] sm:$0xff] %vm94_vm0, %v2098_v1  ;;  %v2092_v4 = vadd.f32 %v3327_v3, %v2953_v42  ;;  %v2053_v5 = vpop.f32.mrb[13].mxu0 }
 0x3a0   :  { %2105 = vst.msk [vmem:[#allocation3 + $0x16] sm:$0xff] %vm94_vm0, %v2097_v2  ;;  %v2091_v6 = vadd.f32 %v2953_v42, %v2053_v5 }
 0x3a1   :  { %v2100_v7 = vmax.f32 %v2092_v4, 0.0 }
 0x3a2   :  { %v2099_v8 = vmax.f32 %v2091_v6, 0.0  ;;  %v3330_v9 = vpop.f32.mrb[14].mxu0  ;;  %v2512_v16 = vld [vmem:[#allocation3 + $0xe] sm:$0xff] }
 0x3a3   :  { %2108 = vst.msk [vmem:[#allocation3 + $0x36] sm:$0xff] %vm94_vm0, %v2100_v7  ;;  %v2094_v10 = vadd.f32 %v3330_v9, %v2953_v42  ;;  %v2063_v11 = vpop.f32.mrb[15].mxu0  ;;  %v2120_v12 = vld [vmem:[#allocation3 + $0x2] sm:$0xff]  ;;  %v2121_v14 = vld [vmem:[#allocation3 + $0xa] sm:$0xff] }
 0x3a4   :  { %v2511_v13 = vld [vmem:[#allocation3 + $0x6] sm:$0xff]  ;;  %2107 = vst.msk [vmem:[#allocation3 + $0x2e] sm:$0xff] %vm94_vm0, %v2099_v8  ;;  %v2093_v15 = vadd.f32 %v2953_v42, %v2063_v11  ;;  %3333 = vmatprep.mubr.msk.f32.mxu1 %vm94_vm0, %v2120_v12 }
 0x3a5   :  { %3375 = vmatprep.mubr.msk.f32.mxu0 %vm94_vm0, %v2511_v13  ;;  %v2102_v18 = vmax.f32 %v2094_v10, 0.0  ;;  %3334 = vmatmul.mubr.msk.f32.vlgmr.msra.gmra.mrb[10].mxu1 %vm94_vm0, %v2121_v14  ;;  %v2111_v32 = vld [vmem:[#allocation3] sm:$0xff]  ;;  %v2112_v33 = vld [vmem:[#allocation3 + $0x8] sm:$0xff] }
 0x3a6   :  { %3376 = vmatmul.mubr.msk.f32.vlgmr.msra.gmra.mrb[16].mxu0 %vm94_vm0, %v2512_v16  ;;  %v2101_v19 = vmax.f32 %v2093_v15, 0.0  ;;  %3346 = vmatpush3.msra.mxu1 %v2119_v41  ;;  %v2514_v23 = vld [vmem:[#allocation3 + $0x1e] sm:$0xff]  ;;  %v2377_v49 = vld [vmem:[#allocation3 + $0xc] sm:$0xff] }
 0x3a7   :  { %2110 = vst.msk [vmem:[#allocation3 + $0x46] sm:$0xff] %vm94_vm0, %v2102_v18  ;;  %v2122_v20 = vld [vmem:[#allocation3 + $0x12] sm:$0xff]  ;;  %v2123_v22 = vld [vmem:[#allocation3 + $0x1a] sm:$0xff]  ;;  %3359 = vmatprep.subr.mxu1 %v2971_v17  ;;  %v2376_v48 = vld [vmem:[#allocation3 + $0x4] sm:$0xff] }
 0x3a8   :  { %v2513_v21 = vld [vmem:[#allocation3 + $0x16] sm:$0xff]  ;;  %2109 = vst.msk [vmem:[#allocation3 + $0x3e] sm:$0xff] %vm94_vm0, %v2101_v19  ;;  %3336 = vmatprep.mubr.msk.f32.mxu1 %vm94_vm0, %v2122_v20  ;;  %v2989_v19 = vld [vmem:[%s4117_s10] ss:$0 sm:$0xff] }
 0x3a9   :  { %3378 = vmatprep.mubr.msk.f32.mxu0 %vm94_vm0, %v2513_v21  ;;  %3337 = vmatmul.mubr.msk.f32.gmra.mrb[12].mxu1 %vm94_vm0, %v2123_v22  ;;  %v2113_v34 = vld [vmem:[#allocation3 + $0x10] sm:$0xff]  ;;  %v2114_v35 = vld [vmem:[#allocation3 + $0x18] sm:$0xff] }
 0x3aa   :  { %3379 = vmatmul.mubr.msk.f32.gmra.mrb[18].mxu0 %vm94_vm0, %v2514_v23  ;;  %v2516_v27 = vld [vmem:[#allocation3 + $0x36] sm:$0xff] }
 0x3ab   :  { %v2124_v24 = vld [vmem:[#allocation3 + $0x2a] sm:$0xff]  ;;  %v2125_v26 = vld [vmem:[#allocation3 + $0x32] sm:$0xff]  ;;  %v2379_v51 = vld [vmem:[#allocation3 + $0x1c] sm:$0xff] }
 0x3ac   :  { %v2515_v25 = vld [vmem:[#allocation3 + $0x2e] sm:$0xff]  ;;  %3339 = vmatprep.mubr.msk.f32.mxu1 %vm94_vm0, %v2124_v24 }
 0x3ad   :  { %3381 = vmatprep.mubr.msk.f32.mxu0 %vm94_vm0, %v2515_v25  ;;  %3340 = vmatmul.mubr.msk.f32.gmra.mrb[14].mxu1 %vm94_vm0, %v2125_v26  ;;  %v2115_v36 = vld [vmem:[#allocation3 + $0x28] sm:$0xff]  ;;  %v2116_v45 = vld [vmem:[#allocation3 + $0x30] sm:$0xff] }
 0x3ae   :  { %3382 = vmatmul.mubr.msk.f32.gmra.mrb[20].mxu0 %vm94_vm0, %v2516_v27  ;;  %v2518_v31 = vld [vmem:[#allocation3 + $0x46] sm:$0xff]  ;;  %v2378_v50 = vld [vmem:[#allocation3 + $0x14] sm:$0xff] }
 0x3af   :  { %v2126_v28 = vld [vmem:[#allocation3 + $0x3a] sm:$0xff]  ;;  %v2127_v30 = vld [vmem:[#allocation3 + $0x42] sm:$0xff]  ;;  %v2380_v52 = vld [vmem:[#allocation3 + $0x2c] sm:$0xff] }
 0x3b0   :  { %v2517_v29 = vld [vmem:[#allocation3 + $0x3e] sm:$0xff]  ;;  %3342 = vmatprep.mubr.msk.f32.mxu1 %vm94_vm0, %v2126_v28  ;;  %v2381_v53 = vld [vmem:[#allocation3 + $0x34] sm:$0xff] }
 0x3b1   :  { %3384 = vmatprep.mubr.msk.f32.mxu0 %vm94_vm0, %v2517_v29  ;;  %3343 = vmatmul.mubr.msk.f32.gmra.mrb[16].mxu1 %vm94_vm0, %v2127_v30  ;;  %v2117_v46 = vld [vmem:[#allocation3 + $0x38] sm:$0xff]  ;;  %v2118_v47 = vld [vmem:[#allocation3 + $0x40] sm:$0xff] }
 0x3b2   :  { %3385 = vmatmul.mubr.msk.f32.gmra.mrb[22].mxu0 %vm94_vm0, %v2518_v31  ;;  %3347 = vmatprep.mubr.msk.f32.mxu1 %vm94_vm0, %v2111_v32  ;;  %v2382_v55 = vld [vmem:[#allocation3 + $0x3c] sm:$0xff]  ;;  %v2383_v37 = vld [vmem:[#allocation3 + $0x44] sm:$0xff] }
 0x3b5   :  { %3348 = vmatmul.mubr.msk.f32.vlgmr.msra.gmra.mrb[18].mxu1 %vm94_vm0, %v2112_v33 }
 0x3b6   :  { %3360 = vmatpush3.msra.mxu1 %v2971_v17  ;;  %3350 = vmatprep.mubr.msk.f32.mxu1 %vm94_vm0, %v2113_v34 }
 0x3b7   :  { %3387 = vmatprep.subr.mxu1 %v3628_v0 }
 0x3b9   :  { %3351 = vmatmul.mubr.msk.f32.gmra.mrb[20].mxu1 %vm94_vm0, %v2114_v35 }
 0x3ba   :  { %3353 = vmatprep.mubr.msk.f32.mxu1 %vm94_vm0, %v2115_v36 }
 0x3bd   :  { %3354 = vmatmul.mubr.msk.f32.gmra.mrb[22].mxu1 %vm94_vm0, %v2116_v45 }
 0x3be   :  { %3356 = vmatprep.mubr.msk.f32.mxu1 %vm94_vm0, %v2117_v46 }
 0x3c1   :  { %3357 = vmatmul.mubr.msk.f32.gmra.mrb[24].mxu1 %vm94_vm0, %v2118_v47 }
 0x3c2   :  { %3361 = vmatprep.mubr.msk.f32.mxu1 %vm94_vm0, %v2376_v48 }
 0x3c5   :  { %3362 = vmatmul.mubr.msk.f32.vlgmr.msra.gmra.mrb[26].mxu1 %vm94_vm0, %v2377_v49 }
 0x3c6   :  { %3364 = vmatprep.mubr.msk.f32.mxu1 %vm94_vm0, %v2378_v50  ;;  %3388 = vmatpush3.msra.mxu1 %v2661_v38 }
 0x3c7   :  { %3392 = vmatprep.subr.mxu1 %v3628_v0 }
 0x3c9   :  { %3365 = vmatmul.mubr.msk.f32.gmra.mrb[28].mxu1 %vm94_vm0, %v2379_v51 }
 0x3ca   :  { %3367 = vmatprep.mubr.msk.f32.mxu1 %vm94_vm0, %v2380_v52 }
 0x3cd   :  { %3368 = vmatmul.mubr.msk.f32.gmra.mrb[30].mxu1 %vm94_vm0, %v2381_v53 }
 0x3ce   :  { %3370 = vmatprep.mubr.msk.f32.mxu1 %vm94_vm0, %v2382_v55 }
 0x3d1   :  { %3371 = vmatmul.mubr.msk.f32.gmra.mrb[32].mxu1 %vm94_vm0, %v2383_v37 }
 0x3d2   :  { %3389 = vmatprep.mubr.msk.f32.mxu1 %vm3629_vm4, %v3628_v0 }
 0x478   :  { %v3335_v40 = vpop.f32.mrb[10].mxu1 }
 0x479   :  { %v3377_v41 = vpop.f32.mrb[16].mxu0  ;;  %v2220_v42 = vpop.f32.mrb[11].mxu1 }
 0x47a   :  { %v2611_v43 = vpop.f32.mrb[17].mxu0 }
 0x47c   :  { %v3338_v44 = vpop.f32.mrb[12].mxu1 }
 0x47d   :  { %v3380_v56 = vpop.f32.mrb[18].mxu0  ;;  %v2228_v57 = vpop.f32.mrb[13].mxu1 }
 0x47e   :  { %v2619_v58 = vpop.f32.mrb[19].mxu0 }
 0x480   :  { %v3341_v59 = vpop.f32.mrb[14].mxu1 }
 0x481   :  { %v3383_v60 = vpop.f32.mrb[20].mxu0  ;;  %v2237_v61 = vpop.f32.mrb[15].mxu1 }
 0x482   :  { %v2628_v62 = vpop.f32.mrb[21].mxu0 }
 0x484   :  { %v3344_v63 = vpop.f32.mrb[16].mxu1 }
 0x485   :  { %v3386_v1 = vpop.f32.mrb[22].mxu0  ;;  %v2245_v2 = vpop.f32.mrb[17].mxu1 }
 0x486   :  { %v2636_v3 = vpop.f32.mrb[23].mxu0 }
 0x488   :  { %v3349_v4 = vpop.f32.mrb[18].mxu1 }
 0x489   :  { %v2343_v5 = vpop.f32.mrb[19].mxu1 }
 0x48c   :  { %v3352_v6 = vpop.f32.mrb[20].mxu1 }
 0x48d   :  { %v2356_v7 = vadd.f32 %v3352_v6, %v3338_v44  ;;  %v2351_v8 = vpop.f32.mrb[21].mxu1 }
 0x490   :  { %v3355_v9 = vpop.f32.mrb[22].mxu1 }
 0x491   :  { %v2360_v10 = vpop.f32.mrb[23].mxu1 }
 0x494   :  { %v3358_v11 = vpop.f32.mrb[24].mxu1 }
 0x495   :  { %v2373_v12 = vadd.f32 %v3358_v11, %v3344_v63  ;;  %v2368_v13 = vpop.f32.mrb[25].mxu1 }
 0x498   :  { %v3363_v14 = vpop.f32.mrb[26].mxu1 }
 0x499   :  { %v2476_v15 = vpop.f32.mrb[27].mxu1 }
 0x49c   :  { %v3366_v16 = vpop.f32.mrb[28].mxu1 }
 0x49d   :  { %v2509_v17 = vadd.f32 %v3366_v16, %v2356_v7  ;;  %v2484_v18 = vpop.f32.mrb[29].mxu1 }
 0x49f   :  { %v2644_v20 = vadd.f32 %v3380_v56, %v2509_v17 }
 0x4a0   :  { %v3369_v21 = vpop.f32.mrb[30].mxu1 }
 0x4a1   :  { %v2653_v22 = vadd.f32 %v2989_v19, %v2644_v20  ;;  %v2493_v23 = vpop.f32.mrb[31].mxu1 }
 0x4a3   :  { %v2657_v24 = vadd.f32 %v2653_v22, %v4016_v54  ;;  %v2662_v54 = vld [vmem:[%s4119_s12] sm:$0x1] }
 0x4a4   :  { %v3372_v25 = vpop.f32.mrb[32].mxu1 }
 0x4a5   :  { %v2659_v26 = vmax.f32 %v2657_v24, 0.0  ;;  %v2510_v27 = vadd.f32 %v3372_v25, %v2373_v12  ;;  %v2501_v28 = vpop.f32.mrb[33].mxu1 }
 0x4a7   :  { %v2664_v29 = vrot.slane %v2659_v26, 7  ;;  %v2645_v30 = vadd.f32 %v3386_v1, %v2510_v27 }
 0x4a9   :  { %v2654_v31 = vadd.f32 %v2989_v19, %v2645_v30  ;;  %3390 = vmatmul.mubr.msk.f32.vlgmr.msra.gmra.mrb[34].mxu1 %vm94_vm0, %v2664_v29 }
 0x4aa   :  { %3393 = vmatpush3.msra.mxu1 %v2661_v38  ;;  %3394 = vmatprep.mubr.msk.f32.mxu1 %vm3629_vm4, %v3628_v0 }
 0x4ab   :  { %v2658_v32 = vadd.f32 %v2654_v31, %v4023_v39 }
 0x4ad   :  { %v2660_v33 = vmax.f32 %v2658_v32, 0.0 }
 0x4af   :  { %v2740_v34 = vrot.slane %v2660_v33, 7 }
 0x4b1   :  { %3395 = vmatmul.mubr.msk.f32.vlgmr.msra.gmra.mrb[36].mxu1 %vm94_vm0, %v2740_v34 }
 0x57c   :  { %v2733_v35 = vpop.f32.mrb[34].mxu1 }
 0x57d   :  { %v2734_v36 = vadd.f32 %v2733_v35, %v2662_v54  ;;  %v3391_v45 = vpop.f32.mrb[35].mxu1 }
 0x57f   :  { %2738 = vst.msk [vmem:[#allocation12] sm:$0x1] %vm2737_vm5, %v2734_v36 }
 0x584   :  { %v2809_v46 = vpop.f32.mrb[36].mxu1 }
 0x585   :  { %v2810_v47 = vadd.f32 %v2809_v46, %v2662_v54  ;;  %v3396_v0 = vpop.f32.mrb[37].mxu1 }
 0x587   :  { %2813 = vst.msk [vmem:[#allocation12 + $0x1] sm:$0x1] %vm2737_vm5, %v2810_v47 }
 0x588   :  { %3603 = shalt.err (!%p3600_p8)
}
 0x589   :  { %s3604_s24 = scalar_lea.hbm %s4120_s13, 32 }
 0x58a   :  { %p3605_p9 = scmp.ne.s32.totalorder %s4120_s13, %s3604_s24  ;;  %p3608_p10 = scmp.lt.u32.totalorder %s3604_s24, %s4120_s13 }
 0x58c   :  { %p3610_p11 = pnand %p3608_p10, %p3605_p9 }
 0x58e   :  { %3613 = shalt.err (!%p3610_p11)
}
 0x58f   :  { %2823 = dma.vmem_to_hbm [thread:$0]  %s2821_s2, 32, %s4120_s13, [#allocation6]  }
 0x590   :  { %3620 = dma.done.wait [#allocation6], 32  }
 0x591   :  { %3621 = vsyncadd [#allocation6], 4294967264 }
 0x592   :  { %2827 = vsyncpa [#allocation5], 1 }
 0x593   :  { %2828 = vsyncpa [#allocation8], 1 }
 0x594   :  { %2829 = vsyncpa [#allocation11], 1 }
 0x595   :  { %2830 = vsyncpa [#allocation6], 1 }

</bundles_post_ra>
